<compile_context>
chip_gen: v7x
topology: tpu7x:2x2x1
jax: 0.10.0
libtpu: 0.0.40
codegen_flags: <defaults>
</compile_context>

<pallas_src>
import jax
import jax.numpy as jnp
import numpy as np
from jax.experimental import pallas as pl
from jax.experimental.pallas import tpu as pltpu

_LANE = 128
_SUBLANE = 8


def _round_up(v, m):
    return (v + m - 1) // m * m


def _pad_to(a, shape):
    return jnp.pad(a, [(0, t - s) for s, t in zip(a.shape, shape)])


def _sig(z):
    # sigmoid(z) as a single EUP transcendental (exact identity).
    return 0.5 * jnp.tanh(0.5 * z) + 0.5


def _make_kernel(n_valid, tile_n, d_pad, U, K, num_middle, has_last,
                 has_row_pad):
    """Kernel: grid = (batch tiles [parallel], node groups [arbitrary])."""
    UK = U * K

    def kernel(*refs):
        x_ref, xcols_ref, w0_ref, b0_ref, w0rows_ref = refs[:5]
        pos = 5
        wmid_refs = [refs[pos + 2 * t] for t in range(num_middle)]
        bmid_refs = [refs[pos + 2 * t + 1] for t in range(num_middle)]
        pos += 2 * num_middle
        if has_last:
            wlast_ref, blast_ref = refs[pos], refs[pos + 1]
            pos += 2
        weff_ref = refs[pos]
        out_ref, l2_ref = refs[pos + 1], refs[pos + 2]
        base_ref, acc_ref = refs[pos + 3], refs[pos + 4]

        i = pl.program_id(0)   # batch tile (parallel)
        g = pl.program_id(1)   # node group (reduction axis of the fc1 sum)

        @pl.when(g == 0)
        def _init():
            # Layer 0 applied once per batch tile to the *un-zeroed* x; the
            # per-node column zeroing becomes a rank-1 update below.
            base_ref[...] = (
                jnp.dot(x_ref[...], w0_ref[...],
                        preferred_element_type=jnp.float32) + b0_ref[...])
            acc_ref[...] = jnp.zeros_like(acc_ref)

        base = base_ref[...]                     # (tile_n, p0)
        xg = xcols_ref[0]                        # (tile_n, U)  group's x columns
        w0g = w0rows_ref[0]                      # (U, p0)      group's W0 rows
        weffg = weff_ref[0]                      # (U*K, d_pad) group's fc1 rows
        wmids = [r[...] for r in wmid_refs]
        bmids = [r[...] for r in bmid_refs]

        if has_last:
            # Group-packed pre-activations of the last locally-connected layer;
            # member u occupies lanes [u*K, (u+1)*K).
            z = jnp.zeros((tile_n, UK), jnp.float32) + blast_ref[...]
        else:
            delta = jnp.zeros((tile_n, d_pad), jnp.float32)

        for u in range(U):                       # static unroll over the group
            xcol = xg[:, u:u + 1]                # (tile_n, 1), column j = g*U+u
            # rank-1 zero-column trick:
            #   sigmoid((x with col j zeroed) @ W0 + b0)
            #     == sigmoid(base - x[:, j] (x) W0_flat[j, :])
            h = _sig(base - xcol * w0g[u:u + 1, :])
            for wm, bm in zip(wmids, bmids):     # k-fused middle layers
                h = _sig(jnp.dot(h, wm,
                                 preferred_element_type=jnp.float32) + bm)
            if has_last:
                # Shifted last-layer weights: member u's output lands in its
                # own K lanes, every other lane is exactly 0, so the running
                # sum packs the whole group without any lane concatenation.
                z = z + jnp.dot(h, wlast_ref[u],
                                preferred_element_type=jnp.float32)
            else:
                delta = delta + jnp.dot(h, weffg[u * K:(u + 1) * K, :],
                                        preferred_element_type=jnp.float32)

        if has_last:
            phi_grp = _sig(z)                    # (tile_n, U*K) == phi of group
            # group-fused fc1 contraction + single accumulator update
            delta = jnp.dot(phi_grp, weffg, preferred_element_type=jnp.float32)
        acc_ref[...] += delta

        @pl.when(g == pl.num_programs(1) - 1)
        def _finalize():
            acc = acc_ref[...]
            out_ref[...] = acc
            sq = acc * acc
            if has_row_pad:
                # batch-padding rows must not contribute to l2 (out rows are
                # sliced away in the wrapper anyway).
                rows = i * tile_n + jax.lax.broadcasted_iota(
                    jnp.int32, (tile_n, 1), 0)
                sq = jnp.where(rows < n_valid, sq, 0.0)
            l2_ref[...] = jnp.sum(sq).reshape(1, 1, 1)

    return kernel


def scalable_dag_forward(x, layer_ws, layer_bs, w_pos, w_neg, *,
                         tile_n=None, group_size=None):
    """Pallas implementation of ScalableDAG_v1_2.forward.

    Returns (out [n, d], l2_reg_store scalar)."""
    x = jnp.asarray(x, jnp.float32)
    n, d = x.shape
    K = int(layer_ws[0].shape[0])
    dims = [int(layer_ws[0].shape[1])] + [int(w.shape[2]) for w in layer_ws]
    assert dims[0] == d and dims[-1] == 1
    L = len(layer_ws)
    num_middle = max(0, L - 2)
    has_last = L >= 2
    f32 = jnp.float32

    # ---- node grouping (static unroll width of the per-node work) ----------
    if group_size is None:
        group_size = max(1, min(8, _LANE // max(1, K)))
    U = int(max(1, min(int(group_size), d)))
    d_up = _round_up(d, U)
    num_groups = d_up // U
    UK = U * K
    d_pad = _round_up(d_up, _LANE)

    fused = [K * dims[l + 1] for l in range(L)]      # k-fused layer widths
    p = [_round_up(f, _LANE) for f in fused]
    p[-1] = fused[-1]                                # last layer kept at width K
    p0 = p[0]

    # ---- layer 0 fused over k: (d_pad, K*m1) --------------------------------
    w0 = jnp.asarray(layer_ws[0], f32)               # (K, d, m1)
    w0_flat = _pad_to(jnp.transpose(w0, (1, 0, 2)).reshape(d, fused[0]),
                      (d_pad, p0))
    b0_flat = _pad_to(jnp.asarray(layer_bs[0], f32).reshape(1, fused[0]),
                      (1, p0))
    w0rows_grp = w0_flat[:d_up].reshape(num_groups, U, p0)

    # ---- middle locally-connected layers: block-diagonal k-fusion -----------
    # TODO(synk): for very wide fused layers (K*m >> 128) a per-k loop would
    # avoid the block-diag zero blocks; fine at these sizes.
    mids = []
    for l in range(1, L - 1):
        wl = jnp.asarray(layer_ws[l], f32)           # (K, m_l, m_{l+1})
        wbd = jax.scipy.linalg.block_diag(*[wl[k] for k in range(K)])
        wbd = _pad_to(wbd, (p[l - 1], p[l]))
        bfl = _pad_to(jnp.asarray(layer_bs[l], f32).reshape(1, fused[l]),
                      (1, p[l]))
        mids += [wbd, bfl]

    # ---- last locally-connected layer: "shifted" group-packed weights -------
    last = []
    if has_last:
        wl = jnp.asarray(layer_ws[L - 1], f32)       # (K, m_{L-1}, 1)
        wlast_bd = jax.scipy.linalg.block_diag(*[wl[k] for k in range(K)])
        wlast_bd = _pad_to(wlast_bd, (p[L - 2], K))  # (p_prev, K)
        shifted = [jnp.pad(wlast_bd, ((0, 0), (u * K, (U - 1 - u) * K)))
                   for u in range(U)]
        wlast_shift = jnp.stack(shifted, axis=0)     # (U, p_prev, U*K)
        blast_grp = jnp.tile(
            jnp.asarray(layer_bs[L - 1], f32).reshape(1, K), (1, U))
        last = [wlast_shift, blast_grp]

    # ---- effective fc1 weight, grouped per node block ------------------------
    w_eff = (jnp.asarray(w_pos, f32) - jnp.asarray(w_neg, f32)).T   # (d*K, d)
    w_eff = _pad_to(w_eff, (d_up * K, d_pad)).reshape(num_groups, UK, d_pad)

    # ---- batch tiling / VMEM budget ------------------------------------------
    p_max = max(p[:-1]) if L >= 2 else p[0]
    row_bytes = 4 * (6 * d_pad + 2 * p0 + 4 * p_max + 2 * _LANE)
    try:
        vmem_cap = int(pltpu.get_tpu_info().vmem_capacity_bytes)
    except Exception:
        vmem_cap = 64 << 20
    tile_budget = (24 << 20) if vmem_cap > (64 << 20) else (12 << 20)
    if tile_n is None:
        cap = max(_SUBLANE, (tile_budget // row_bytes) // _SUBLANE * _SUBLANE)
        tile_n = int(min(_round_up(n, _SUBLANE), min(cap, 2048)))
    tile_n = max(_SUBLANE, _round_up(int(tile_n), _SUBLANE))
    n_pad = _round_up(n, tile_n)
    num_tiles = n_pad // tile_n
    has_row_pad = n_pad != n

    x_p = _pad_to(x, (n_pad, d_pad))
    # Group-major view of x's columns so the BlockSpec streams exactly one
    # group's U columns per grid step (no dynamic lane slicing in-kernel).
    xcols_grp = jnp.transpose(
        x_p[:, :d_up].reshape(n_pad, num_groups, U), (1, 0, 2))

    inputs = [x_p, xcols_grp, w0_flat, b0_flat, w0rows_grp] + mids + last + [w_eff]

    def _const_spec(a):
        nd = a.ndim
        return pl.BlockSpec(a.shape, lambda i, g: (0,) * nd)

    in_specs = [
        pl.BlockSpec((tile_n, d_pad), lambda i, g: (i, 0)),      # x
        pl.BlockSpec((1, tile_n, U), lambda i, g: (g, i, 0)),    # x cols of group g
        _const_spec(w0_flat),
        _const_spec(b0_flat),
        pl.BlockSpec((1, U, p0), lambda i, g: (g, 0, 0)),        # W0 rows of group g
    ]
    in_specs += [_const_spec(a) for a in mids]
    in_specs += [_const_spec(a) for a in last]
    in_specs += [pl.BlockSpec((1, UK, d_pad), lambda i, g: (g, 0, 0))]  # fc1 rows

    out_specs = (
        pl.BlockSpec((tile_n, d_pad), lambda i, g: (i, 0)),
        pl.BlockSpec((1, 1, 1), lambda i, g: (i, 0, 0)),
    )
    out_shape = (
        jax.ShapeDtypeStruct((n_pad, d_pad), jnp.float32),
        jax.ShapeDtypeStruct((num_tiles, 1, 1), jnp.float32),
    )
    scratch_shapes = [
        pltpu.VMEM((tile_n, p0), jnp.float32),      # layer-0 activations (base)
        pltpu.VMEM((tile_n, d_pad), jnp.float32),   # output accumulator
    ]

    const_bytes = sum(int(a.size) * 4
                      for a in [w0_flat, b0_flat] + mids + last)
    group_block_bytes = (U * p0 + UK * d_pad + tile_n * _LANE) * 4
    vmem_est = (tile_n * row_bytes + 2 * const_bytes
                + 2 * group_block_bytes + (4 << 20))
    vmem_limit = int(min(max(vmem_est, 32 << 20), vmem_cap * 3 // 4))

    kernel = _make_kernel(n, tile_n, d_pad, U, K, num_middle, has_last,
                          has_row_pad)

    out_p, l2_parts = pl.pallas_call(
        kernel,
        grid=(num_tiles, num_groups),
        in_specs=in_specs,
        out_specs=out_specs,
        out_shape=out_shape,
        scratch_shapes=scratch_shapes,
        compiler_params=pltpu.CompilerParams(
            # batch tiles are independent (megacore-parallel on v7x); the
            # node-group axis carries the fc1 accumulation -> arbitrary.
            dimension_semantics=("parallel", "arbitrary"),
            vmem_limit_bytes=vmem_limit,
        ),
    )(*inputs)

    return out_p[:n, :d], jnp.sum(l2_parts) / n


def reference_forward(x, layer_ws, layer_bs, w_pos, w_neg):
    """Pure-JAX reference (mirrors the PyTorch code), full f32 precision."""
    n, d = x.shape
    K = layer_ws[0].shape[0]
    hp = jax.lax.Precision.HIGHEST
    phis = []
    for j in range(d):
        x_m = x.at[:, j].set(0.0)
        h = jnp.broadcast_to(x_m[:, None, :], (n, K, d))
        for w, b in zip(layer_ws, layer_bs):
            h = jax.nn.sigmoid(
                jnp.einsum('nki,kio->nko', h, w, precision=hp) + b[None])
        phis.append(h[:, :, 0])
    phi = jnp.stack(phis, axis=1).reshape(n, d * K)
    out = jnp.dot(phi, (w_pos - w_neg).T, precision=hp)
    l2 = jnp.sum(out ** 2) / n
    return out, l2


def _make_params(key, n, d, K, dims):
    ks = jax.random.split(key, 2 * (len(dims) - 1) + 3)
    x = jax.random.normal(ks[0], (n, d), dtype=jnp.float32)
    layer_ws, layer_bs = [], []
    for l in range(len(dims) - 1):
        layer_ws.append(0.5 * jax.random.normal(
            ks[1 + 2 * l], (K, dims[l], dims[l + 1]), dtype=jnp.float32))
        layer_bs.append(0.1 * jax.random.normal(
            ks[2 + 2 * l], (K, dims[l + 1]), dtype=jnp.float32))
    # fc1_pos / fc1_neg are zero-initialized in the PyTorch module; use small
    # non-zero values so the fc1 matmul path is exercised.
    w_pos = 0.3 * jax.random.uniform(ks[-2], (d, d * K), dtype=jnp.float32)
    w_neg = 0.3 * jax.random.uniform(ks[-1], (d, d * K), dtype=jnp.float32)
    return x, layer_ws, layer_bs, w_pos, w_neg


if __name__ == "__main__":
    # Make the pure-JAX reference use true f32 matmuls for the comparison.
    jax.config.update("jax_default_matmul_precision", "highest")

    key = jax.random.PRNGKey(0)
    k1, k2 = jax.random.split(key)

    # Deliberately unaligned sizes to exercise lane padding, multi-tile grid,
    # ragged batch masking, multi-group accumulation and group padding.
    configs = [
        # (n, d, K, dims, tile_n, group_size)
        (20, 6, 3, [6, 5, 1], 8, 2),          # 3 batch tiles (ragged), 3 groups
        (16, 10, 4, [10, 8, 6, 1], None, 4),  # middle layer, padded group member
    ]
    for cfg_key, (n, d, K, dims, tn, gs) in zip((k1, k2), configs):
        x, lws, lbs, wp, wn = _make_params(cfg_key, n, d, K, dims)
        out, l2 = scalable_dag_forward(x, lws, lbs, wp, wn,
                                       tile_n=tn, group_size=gs)
        out = jax.block_until_ready(out)
        l2 = jax.block_until_ready(l2)

        ref_out, ref_l2 = reference_forward(x, lws, lbs, wp, wn)
        np.testing.assert_allclose(np.asarray(out), np.asarray(ref_out),
                                   rtol=1e-3, atol=1e-4)
        np.testing.assert_allclose(float(l2), float(ref_l2),
                                   rtol=1e-3, atol=1e-4)

    print("KERNEL_OK")
</pallas_src>

<mosaic_0001>
module attributes {stable_mosaic.version = 11 : i64} {
  func.func @kernel(%arg0: i32, %arg1: i32, %arg2: memref<8x128xf32, #tpu.memory_space<vmem>>, %arg3: memref<1x8x2xf32, #tpu.memory_space<vmem>>, %arg4: memref<128x128xf32, #tpu.memory_space<vmem>>, %arg5: memref<1x128xf32, #tpu.memory_space<vmem>>, %arg6: memref<1x2x128xf32, #tpu.memory_space<vmem>>, %arg7: memref<2x128x6xf32, #tpu.memory_space<vmem>>, %arg8: memref<1x6xf32, #tpu.memory_space<vmem>>, %arg9: memref<1x6x128xf32, #tpu.memory_space<vmem>>, %arg10: memref<8x128xf32, #tpu.memory_space<vmem>>, %arg11: memref<1x1x1xf32, #tpu.memory_space<vmem>>, %arg12: memref<8x128xf32, #tpu.memory_space<vmem>>, %arg13: memref<8x128xf32, #tpu.memory_space<vmem>>) attributes {dimension_semantics = [#tpu.dimension_semantics<parallel>, #tpu.dimension_semantics<arbitrary>], iteration_bounds = array<i64: 3, 3>, scalar_prefetch = 0 : i64, scratch_operands = 2 : i64, tpu.core_type = #tpu.core_type<tc>, window_params = [{transform_indices = @transform_0, window_bounds = array<i64: 8, 128>}, {transform_indices = @transform_1, window_bounds = array<i64: 1, 8, 2>}, {pipeline_mode = #tpu.pipeline_mode<synchronous>, transform_indices = @transform_2, window_bounds = array<i64: 128, 128>}, {pipeline_mode = #tpu.pipeline_mode<synchronous>, transform_indices = @transform_3, window_bounds = array<i64: 1, 128>}, {transform_indices = @transform_4, window_bounds = array<i64: 1, 2, 128>}, {pipeline_mode = #tpu.pipeline_mode<synchronous>, transform_indices = @transform_5, window_bounds = array<i64: 2, 128, 6>}, {pipeline_mode = #tpu.pipeline_mode<synchronous>, transform_indices = @transform_6, window_bounds = array<i64: 1, 6>}, {transform_indices = @transform_7, window_bounds = array<i64: 1, 6, 128>}, {transform_indices = @transform_8, window_bounds = array<i64: 8, 128>}, {transform_indices = @transform_9, window_bounds = array<i64: 1, 1, 1>}]} {
    %c0_i32 = arith.constant 0 : i32
    %0 = arith.cmpi eq, %arg1, %c0_i32 : i32
    %1 = arith.extui %0 : i1 to i32
    %c0_i32_0 = arith.constant 0 : i32
    %2 = arith.cmpi ne, %1, %c0_i32_0 : i32
    scf.if %2 {
      %c0_35 = arith.constant 0 : index
      %c0_36 = arith.constant 0 : index
      %62 = vector.load %arg2[%c0_35, %c0_36] : memref<8x128xf32, #tpu.memory_space<vmem>>, vector<8x128xf32>
      %c0_37 = arith.constant 0 : index
      %c0_38 = arith.constant 0 : index
      %63 = vector.load %arg4[%c0_37, %c0_38] : memref<128x128xf32, #tpu.memory_space<vmem>>, vector<128x128xf32>
      %cst_39 = arith.constant dense<0.000000e+00> : vector<8x128xf32>
      %64 = tpu.matmul %62, %63, %cst_39 {dimension_numbers = #tpu.dot_dimension_numbers<[1], [0], [0], [1], [0, 0, 1, 1], [], []>, precision = #tpu.contract_precision<fp32>} : vector<8x128xf32>, vector<128x128xf32>, vector<8x128xf32> -> vector<8x128xf32>
      %c0_40 = arith.constant 0 : index
      %c0_41 = arith.constant 0 : index
      %65 = vector.load %arg5[%c0_40, %c0_41] : memref<1x128xf32, #tpu.memory_space<vmem>>, vector<1x128xf32>
      %66 = vector.broadcast %65 : vector<1x128xf32> to vector<8x128xf32>
      %67 = arith.addf %64, %66 : vector<8x128xf32>
      %c0_42 = arith.constant 0 : index
      %c0_43 = arith.constant 0 : index
      %68 = vector.load %arg12[%c0_42, %c0_43] : memref<8x128xf32, #tpu.memory_space<vmem>>, vector<8x128xf32>
      tpu.vector_store %arg12[%c0_42, %c0_43], %67 {strides = array<i32>} : memref<8x128xf32, #tpu.memory_space<vmem>>, vector<8x128xf32>,
      %cst_44 = arith.constant 0.000000e+00 : f32
      %69 = vector.broadcast %cst_44 : f32 to vector<8x128xf32>
      %c0_45 = arith.constant 0 : index
      %c0_46 = arith.constant 0 : index
      %70 = vector.load %arg13[%c0_45, %c0_46] : memref<8x128xf32, #tpu.memory_space<vmem>>, vector<8x128xf32>
      tpu.vector_store %arg13[%c0_45, %c0_46], %69 {strides = array<i32>} : memref<8x128xf32, #tpu.memory_space<vmem>>, vector<8x128xf32>,
    } else {
    }
    %c0 = arith.constant 0 : index
    %c0_1 = arith.constant 0 : index
    %3 = vector.load %arg12[%c0, %c0_1] : memref<8x128xf32, #tpu.memory_space<vmem>>, vector<8x128xf32>
    %c0_2 = arith.constant 0 : index
    %c0_3 = arith.constant 0 : index
    %c0_4 = arith.constant 0 : index
    %4 = vector.load %arg3[%c0_2, %c0_3, %c0_4] : memref<1x8x2xf32, #tpu.memory_space<vmem>>, vector<1x8x2xf32>
    %5 = vector.shape_cast %4 : vector<1x8x2xf32> to vector<8x2xf32>
    %c0_5 = arith.constant 0 : index
    %c0_6 = arith.constant 0 : index
    %c0_7 = arith.constant 0 : index
    %6 = vector.load %arg6[%c0_5, %c0_6, %c0_7] : memref<1x2x128xf32, #tpu.memory_space<vmem>>, vector<1x2x128xf32>
    %7 = vector.shape_cast %6 : vector<1x2x128xf32> to vector<2x128xf32>
    %c0_8 = arith.constant 0 : index
    %c0_9 = arith.constant 0 : index
    %c0_10 = arith.constant 0 : index
    %8 = vector.load %arg9[%c0_8, %c0_9, %c0_10] : memref<1x6x128xf32, #tpu.memory_space<vmem>>, vector<1x6x128xf32>
    %9 = vector.shape_cast %8 : vector<1x6x128xf32> to vector<6x128xf32>
    %cst = arith.constant 0.000000e+00 : f32
    %10 = vector.broadcast %cst : f32 to vector<8x6xf32>
    %c0_11 = arith.constant 0 : index
    %c0_12 = arith.constant 0 : index
    %11 = vector.load %arg8[%c0_11, %c0_12] : memref<1x6xf32, #tpu.memory_space<vmem>>, vector<1x6xf32>
    %12 = vector.broadcast %11 : vector<1x6xf32> to vector<8x6xf32>
    %13 = arith.addf %10, %12 : vector<8x6xf32>
    %14 = vector.extract_strided_slice %5 {offsets = [0, 0], sizes = [8, 1], strides = [1, 1]} : vector<8x2xf32> to vector<8x1xf32>
    %15 = vector.extract_strided_slice %7 {offsets = [0, 0], sizes = [1, 128], strides = [1, 1]} : vector<2x128xf32> to vector<1x128xf32>
    %16 = vector.broadcast %14 : vector<8x1xf32> to vector<8x128xf32>
    %17 = vector.broadcast %15 : vector<1x128xf32> to vector<8x128xf32>
    %18 = arith.mulf %16, %17 : vector<8x128xf32>
    %19 = arith.subf %3, %18 : vector<8x128xf32>
    %cst_13 = arith.constant 5.000000e-01 : f32
    %20 = vector.broadcast %cst_13 : f32 to vector<8x128xf32>
    %21 = arith.mulf %20, %19 : vector<8x128xf32>
    %22 = math.tanh %21 : vector<8x128xf32>
    %cst_14 = arith.constant 5.000000e-01 : f32
    %23 = vector.broadcast %cst_14 : f32 to vector<8x128xf32>
    %24 = arith.mulf %23, %22 : vector<8x128xf32>
    %cst_15 = arith.constant 5.000000e-01 : f32
    %25 = vector.broadcast %cst_15 : f32 to vector<8x128xf32>
    %26 = arith.addf %24, %25 : vector<8x128xf32>
    %c0_16 = arith.constant 0 : index
    %c0_17 = arith.constant 0 : index
    %c0_18 = arith.constant 0 : index
    %27 = vector.load %arg7[%c0_16, %c0_17, %c0_18] : memref<2x128x6xf32, #tpu.memory_space<vmem>>, vector<1x128x6xf32>
    %28 = vector.shape_cast %27 : vector<1x128x6xf32> to vector<128x6xf32>
    %cst_19 = arith.constant dense<0.000000e+00> : vector<8x6xf32>
    %29 = tpu.matmul %26, %28, %cst_19 {dimension_numbers = #tpu.dot_dimension_numbers<[1], [0], [0], [1], [0, 0, 1, 1], [], []>, precision = #tpu.contract_precision<fp32>} : vector<8x128xf32>, vector<128x6xf32>, vector<8x6xf32> -> vector<8x6xf32>
    %30 = arith.addf %13, %29 : vector<8x6xf32>
    %31 = vector.extract_strided_slice %5 {offsets = [0, 1], sizes = [8, 1], strides = [1, 1]} : vector<8x2xf32> to vector<8x1xf32>
    %32 = vector.extract_strided_slice %7 {offsets = [1, 0], sizes = [1, 128], strides = [1, 1]} : vector<2x128xf32> to vector<1x128xf32>
    %33 = vector.broadcast %31 : vector<8x1xf32> to vector<8x128xf32>
    %34 = vector.broadcast %32 : vector<1x128xf32> to vector<8x128xf32>
    %35 = arith.mulf %33, %34 : vector<8x128xf32>
    %36 = arith.subf %3, %35 : vector<8x128xf32>
    %cst_20 = arith.constant 5.000000e-01 : f32
    %37 = vector.broadcast %cst_20 : f32 to vector<8x128xf32>
    %38 = arith.mulf %37, %36 : vector<8x128xf32>
    %39 = math.tanh %38 : vector<8x128xf32>
    %cst_21 = arith.constant 5.000000e-01 : f32
    %40 = vector.broadcast %cst_21 : f32 to vector<8x128xf32>
    %41 = arith.mulf %40, %39 : vector<8x128xf32>
    %cst_22 = arith.constant 5.000000e-01 : f32
    %42 = vector.broadcast %cst_22 : f32 to vector<8x128xf32>
    %43 = arith.addf %41, %42 : vector<8x128xf32>
    %c1 = arith.constant 1 : index
    %c0_23 = arith.constant 0 : index
    %c0_24 = arith.constant 0 : index
    %44 = vector.load %arg7[%c1, %c0_23, %c0_24] : memref<2x128x6xf32, #tpu.memory_space<vmem>>, vector<1x128x6xf32>
    %45 = vector.shape_cast %44 : vector<1x128x6xf32> to vector<128x6xf32>
    %cst_25 = arith.constant dense<0.000000e+00> : vector<8x6xf32>
    %46 = tpu.matmul %43, %45, %cst_25 {dimension_numbers = #tpu.dot_dimension_numbers<[1], [0], [0], [1], [0, 0, 1, 1], [], []>, precision = #tpu.contract_precision<fp32>} : vector<8x128xf32>, vector<128x6xf32>, vector<8x6xf32> -> vector<8x6xf32>
    %47 = arith.addf %30, %46 : vector<8x6xf32>
    %cst_26 = arith.constant 5.000000e-01 : f32
    %48 = vector.broadcast %cst_26 : f32 to vector<8x6xf32>
    %49 = arith.mulf %48, %47 : vector<8x6xf32>
    %50 = math.tanh %49 : vector<8x6xf32>
    %cst_27 = arith.constant 5.000000e-01 : f32
    %51 = vector.broadcast %cst_27 : f32 to vector<8x6xf32>
    %52 = arith.mulf %51, %50 : vector<8x6xf32>
    %cst_28 = arith.constant 5.000000e-01 : f32
    %53 = vector.broadcast %cst_28 : f32 to vector<8x6xf32>
    %54 = arith.addf %52, %53 : vector<8x6xf32>
    %cst_29 = arith.constant dense<0.000000e+00> : vector<8x128xf32>
    %55 = tpu.matmul %54, %9, %cst_29 {dimension_numbers = #tpu.dot_dimension_numbers<[1], [0], [0], [1], [0, 0, 1, 1], [], []>, precision = #tpu.contract_precision<fp32>} : vector<8x6xf32>, vector<6x128xf32>, vector<8x128xf32> -> vector<8x128xf32>
    %c0_30 = arith.constant 0 : index
    %c0_31 = arith.constant 0 : index
    %56 = vector.load %arg13[%c0_30, %c0_31] : memref<8x128xf32, #tpu.memory_space<vmem>>, vector<8x128xf32>
    %57 = arith.addf %56, %55 : vector<8x128xf32>
    %c0_32 = arith.constant 0 : index
    %c0_33 = arith.constant 0 : index
    %58 = vector.load %arg13[%c0_32, %c0_33] : memref<8x128xf32, #tpu.memory_space<vmem>>, vector<8x128xf32>
    tpu.vector_store %arg13[%c0_32, %c0_33], %57 {strides = array<i32>} : memref<8x128xf32, #tpu.memory_space<vmem>>, vector<8x128xf32>,
    %c2_i32 = arith.constant 2 : i32
    %59 = arith.cmpi eq, %arg1, %c2_i32 : i32
    %60 = arith.extui %59 : i1 to i32
    %c0_i32_34 = arith.constant 0 : i32
    %61 = arith.cmpi ne, %60, %c0_i32_34 : i32
    scf.if %61 {
      %c0_35 = arith.constant 0 : index
      %c0_36 = arith.constant 0 : index
      %62 = vector.load %arg13[%c0_35, %c0_36] : memref<8x128xf32, #tpu.memory_space<vmem>>, vector<8x128xf32>
      %c0_37 = arith.constant 0 : index
      %c0_38 = arith.constant 0 : index
      %63 = vector.load %arg10[%c0_37, %c0_38] : memref<8x128xf32, #tpu.memory_space<vmem>>, vector<8x128xf32>
      tpu.vector_store %arg10[%c0_37, %c0_38], %62 {strides = array<i32>} : memref<8x128xf32, #tpu.memory_space<vmem>>, vector<8x128xf32>,
      %64 = arith.mulf %62, %62 : vector<8x128xf32>
      %c8_i32 = arith.constant 8 : i32
      %65 = arith.muli %arg0, %c8_i32 : i32
      %66 = tpu.iota {dimensions = array<i32: 0>} : vector<8x1xi32>
      %67 = vector.broadcast %65 : i32 to vector<8x1xi32>
      %68 = arith.addi %67, %66 : vector<8x1xi32>
      %c20_i32 = arith.constant 20 : i32
      %69 = vector.broadcast %c20_i32 : i32 to vector<8x1xi32>
      %70 = arith.cmpi slt, %68, %69 : vector<8x1xi32>
      %cst_39 = arith.constant 0.000000e+00 : f32
      %71 = vector.shape_cast %70 : vector<8x1xi1> to vector<8x1xi1>
      %72 = vector.broadcast %71 : vector<8x1xi1> to vector<8x128xi1>
      %73 = vector.broadcast %cst_39 : f32 to vector<8x128xf32>
      %74 = arith.select %72, %64, %73 : vector<8x128xi1>, vector<8x128xf32>
      %75 = vector.shape_cast %74 : vector<8x128xf32> to vector<1x8x128xf32>
      %cst_40 = arith.constant dense<0.000000e+00> : vector<1xf32>
      %76 = vector.multi_reduction <add>, %75, %cst_40 [1, 2] : vector<1x8x128xf32> to vector<1xf32>
      %77 = vector.shape_cast %76 : vector<1xf32> to vector<1x1x1xf32>
      %78 = vector.extract %77[0, 0, 0] : f32 from vector<1x1x1xf32>
      %79 = vector.broadcast %78 : f32 to vector<1x1x1xf32>
      %c0_41 = arith.constant 0 : index
      %c0_42 = arith.constant 0 : index
      %c0_43 = arith.constant 0 : index
      %80 = vector.load %arg11[%c0_41, %c0_42, %c0_43] : memref<1x1x1xf32, #tpu.memory_space<vmem>>, vector<1x1x1xf32>
      tpu.vector_store %arg11[%c0_41, %c0_42, %c0_43], %79 {strides = array<i32>} : memref<1x1x1xf32, #tpu.memory_space<vmem>>, vector<1x1x1xf32>,
    } else {
    }
    return
  }
  func.func @transform_0(%arg0: i32, %arg1: i32) -> (i32, i32) {
    %c0_i32 = arith.constant 0 : i32
    %c0_i32_0 = arith.constant 0 : i32
    return %arg0, %c0_i32 : i32, i32
  }
  func.func @transform_1(%arg0: i32, %arg1: i32) -> (i32, i32, i32) {
    %c0_i32 = arith.constant 0 : i32
    %c0_i32_0 = arith.constant 0 : i32
    return %arg1, %arg0, %c0_i32 : i32, i32, i32
  }
  func.func @transform_2(%arg0: i32, %arg1: i32) -> (i32, i32) {
    %c0_i32 = arith.constant 0 : i32
    %c0_i32_0 = arith.constant 0 : i32
    %c0_i32_1 = arith.constant 0 : i32
    return %c0_i32, %c0_i32_0 : i32, i32
  }
  func.func @transform_3(%arg0: i32, %arg1: i32) -> (i32, i32) {
    %c0_i32 = arith.constant 0 : i32
    %c0_i32_0 = arith.constant 0 : i32
    %c0_i32_1 = arith.constant 0 : i32
    return %c0_i32, %c0_i32_0 : i32, i32
  }
  func.func @transform_4(%arg0: i32, %arg1: i32) -> (i32, i32, i32) {
    %c0_i32 = arith.constant 0 : i32
    %c0_i32_0 = arith.constant 0 : i32
    %c0_i32_1 = arith.constant 0 : i32
    return %arg1, %c0_i32, %c0_i32_0 : i32, i32, i32
  }
  func.func @transform_5(%arg0: i32, %arg1: i32) -> (i32, i32, i32) {
    %c0_i32 = arith.constant 0 : i32
    %c0_i32_0 = arith.constant 0 : i32
    %c0_i32_1 = arith.constant 0 : i32
    %c0_i32_2 = arith.constant 0 : i32
    return %c0_i32, %c0_i32_0, %c0_i32_1 : i32, i32, i32
  }
  func.func @transform_6(%arg0: i32, %arg1: i32) -> (i32, i32) {
    %c0_i32 = arith.constant 0 : i32
    %c0_i32_0 = arith.constant 0 : i32
    %c0_i32_1 = arith.constant 0 : i32
    return %c0_i32, %c0_i32_0 : i32, i32
  }
  func.func @transform_7(%arg0: i32, %arg1: i32) -> (i32, i32, i32) {
    %c0_i32 = arith.constant 0 : i32
    %c0_i32_0 = arith.constant 0 : i32
    %c0_i32_1 = arith.constant 0 : i32
    return %arg1, %c0_i32, %c0_i32_0 : i32, i32, i32
  }
  func.func @transform_8(%arg0: i32, %arg1: i32) -> (i32, i32) {
    %c0_i32 = arith.constant 0 : i32
    %c0_i32_0 = arith.constant 0 : i32
    return %arg0, %c0_i32 : i32, i32
  }
  func.func @transform_9(%arg0: i32, %arg1: i32) -> (i32, i32, i32) {
    %c0_i32 = arith.constant 0 : i32
    %c0_i32_0 = arith.constant 0 : i32
    %c0_i32_1 = arith.constant 0 : i32
    return %arg0, %c0_i32, %c0_i32_0 : i32, i32, i32
  }
}

</mosaic_0001>

<bundles_post_ra>
// kernel: tpu_custom_call.1
= control target key start
LH: loop header
LB: loop body
LE: loop exit
PB: predicated region body
PF: predicated region fallthrough
CT: control target
= control target key end

     0   :  { %s6152_s0 = inlined_call_operand.vmem [shape: f32[24,128], index: 0, kind: input, shape index: {}]   ;;  %s6153_s1 = inlined_call_operand.vmem [shape: f32[3,24,2], index: 1, kind: input, shape index: {}]   ;;  %s6154_s2 = inlined_call_operand.vmem [shape: f32[128,128], index: 2, kind: input, shape index: {}]   ;;  %s6155_s3 = inlined_call_operand.vmem [shape: f32[1,128], index: 3, kind: input, shape index: {}]   ;;  %s6156_s4 = inlined_call_operand.vmem [shape: f32[3,2,128], index: 4, kind: input, shape index: {}]   ;;  %s6157_s5 = inlined_call_operand.vmem [shape: f32[2,128,6], index: 5, kind: input, shape index: {}]   ;;  %s6158_s6 = inlined_call_operand.vmem [shape: f32[1,6], index: 6, kind: input, shape index: {}]   ;;  %s6159_s7 = inlined_call_operand.vmem [shape: f32[3,6,128], index: 7, kind: input, shape index: {}]   ;;  %s6160_s8 = inlined_call_operand.hbm [shape: f32[24,128], index: 8, kind: output, shape index: {0}]   ;;  %s6161_s9 = inlined_call_operand.vmem [shape: f32[3,1,1], index: 9, kind: output, shape index: {1}]  }
   0x1   :  { %6265 = sst [smem:[#allocation40_spill]] %s6160_s8 }
   0x2   :  { %15 = vsyncpa [#allocation5], 0 }
   0x3   :  { %17 = vsyncpa [#allocation5 + $0x1], 0  ;;  %s4805_s30 = smov 0   ;;  %s4807_s10 = smov 0  }
   0x4   :  { %s4809_s11 = smov 0   ;;  %s4811_s12 = smov 0  }
   0x5   :  { %s4813_s13 = smov 0   ;;  %s4815_s14 = smov 0  }
   0x6   :  { %s4817_s15 = smov 0   ;;  %s4819_s16 = smov 0  }
   0x7 LB: > { %6266 = sst [smem:[#allocation7_spill]] %s4716_s30  ;;  %s3083_s17 = sadd.s32 4294967295, %s4744_s16   ;;  %s4744_s16 = sphi %s4819_s16, %s23_s16   ;;  %s4740_s15 = sphi %s4817_s15, %s6399_s15   ;;  %s4736_s14 = sphi %s4815_s14, %s6398_s14   ;;  %s4732_s13 = sphi %s4813_s13, %s6397_s13   ;;  %s4728_s12 = sphi %s4811_s12, %s6396_s12   ;;  %s4724_s11 = sphi %s4809_s11, %s6395_s11   ;;  %s4720_s10 = sphi %s4807_s10, %s6394_s10   ;;  %s4716_s30 = sphi %s4805_s30, %s6393_s30  }
   0x8   : > { %6267 = sst [smem:[#allocation8_spill]] %s4720_s10  ;;  %s3084_s18 = sadd.s32 4294967294, %s4744_s16  }
   0x9   : > { %6268 = sst [smem:[#allocation9_spill]] %s4724_s11  ;;  %s32_s19 = sadd.s32 1, %s4736_s14 }
   0xa   : > { %6269 = sst [smem:[#allocation10_spill]] %s4736_s14  ;;  %p33_p0 = scmp.ge.s32.totalorder %s32_s19, 3 }
   0xb   : > { %6270 = sst [smem:[#allocation11_spill]] %s4740_s15  ;;  %s35_s20 = sadd.s32 1, %s4740_s15 }
   0xc   : > { %6271 = sst [smem:[#allocation12_spill]] %s4744_s16  ;;  %p242_p1 = scmp.ne.s32.totalorder %s4724_s11, %s4720_s10 }
   0xd   : > { %p243_p2 = scmp.eq.s32.totalorder %s3083_s17, 8  ;;  %s6401_s19 = smov (%p33_p0, %s32_s19), 0 }
   0xe   : > { %6272 = sst [smem:[#allocation13_spill]] %s6401_s19  ;;  %s6403_s20 = smov (!%p33_p0, %s35_s20), %s4740_s15 }
   0xf   : > { %p4854_p3 = por %p243_p2, %p242_p1  ;;  %p248_p4 = scmp.ne.s32.totalorder %s4720_s10, %s4716_s30 }
  0x10   : > { %p37_p5 = scmp.ge.s32.totalorder %s6403_s20, 3  ;;  %p249_p6 = scmp.eq.s32.totalorder %s3084_s18, 8 }
  0x11   : > { %s6273_s21 = scalar_select %p4854_p3, 1, 0 }
  0x12   : > { %p3087_p7 = scmp.ge.s32.totalorder %s4744_s16, 1  ;;  %p337_p8 = scmp.lt.s32.totalorder %s4744_s16, 10 }
  0x13   : > { %6274 = sst [smem:[#allocation14_spill]] %s6273_s21  ;;  %s6405_s20 = smov (%p37_p5, %s6403_s20), 0 }
  0x14   : > { %6275 = sst [smem:[#allocation15_spill]] %s6405_s20  ;;  %p4864_p9 = por %p249_p6, %p248_p4 }
  0x15   : > { %p338_p10 = pnand %p3087_p7, %p337_p8  ;;  %s229_s23 = ssub.s32 %s4740_s15, %s6405_s20 }
  0x16   : > { %s6276_s22 = scalar_select %p4864_p9, 1, 0 }
  0x17   : > { %s232_s24 = sadd.s32 1, %s4724_s11  ;;  %p230_p11 = scmp.eq.s32.totalorder %s229_s23, 0 }
  0x18   : > { %6277 = sst [smem:[#allocation16_spill]] %s6276_s22  ;;  %341 = sbr.rel (%p338_p10) target bundleno = 1399 (0x577), region = 52 }
  0x19   : > { %s4872_s25 = scalar_select %p230_p11, %s4724_s11, %s232_s24  }
  0x1b   : > { %6278 = sst [smem:[#allocation17_spill]] %s4872_s25 }
  0x1f   : > { %s6164_s26 = sand.u32 1, %s4720_s10   ;;  %p391_p12 = scmp.lt.s32.totalorder %s4732_s13, 2 }
  0x20   : > { %s4878_s27 = sshll.u32 %s6164_s26, 3  ;;  %p395_p13 = scmp.lt.s32.totalorder %s4728_s12, 2 }
  0x21   : > { %s4882_s28 = scalar_select %p391_p12, %s4732_s13, 2 }
  0x22   : > { %s396_s29 = scalar_select %p395_p13, %s4728_s12, 2 }
  0x23   : > { %s3089_s17 = sshll.u32 %s4882_s28, 3  ;;  %s385_s20 = scalar_lea.vmem [#allocation4], %s4878_s27 }
  0x24   : > { %s4893_s15 = scalar_lea.vmem %s6152_s0, %s3089_s17  ;;  %s4560_s26 = smul.u32 3, %s396_s29 }
  0x25   : > { %s3091_s14 = sshll.u32 %s396_s29, 1  ;;  %s3092_s25 = sshll.u32 %s396_s29, 3 }
  0x26   : > { %s400_s11 = sadd.s32 %s4560_s26, %s4882_s28  ;;  %s4899_s16 = scalar_lea.vmem %s6156_s4, %s3091_s14 }
  0x27   : > { %s3090_s8 = sshll.u32 %s400_s11, 3  ;;  %s4904_s18 = scalar_lea.vmem %s6159_s7, %s3092_s25 }
  0x28   : > { %s4909_s19 = scalar_lea.vmem %s6153_s1, %s3090_s8  ;;  %p3093_p0 = scmp.ne.s32.totalorder %s4728_s12, 0 }
  0x29   : > { %v419_v0 = vld [vmem:[%s6154_s2] sm:$0xff] (!%p3093_p0)  ;;  %v420_v1 = vld [vmem:[%s6154_s2 + $0x8] sm:$0xff] (!%p3093_p0)  ;;  %v421_v2 = vld [vmem:[%s6154_s2 + $0x10] sm:$0xff] (!%p3093_p0)  ;;  %v4746_v3 = vmov (!%p3093_p0), 0.0|0.0   ;;  %v4747_v8 = vmov (!%p3093_p0), 0.0   ;;  %vm4748_vm0 = vmmov (!%p3093_p0), 0  }
  0x2a   : > { %417 = sbr.rel (%p3093_p0) target bundleno = 358 (0x166), region = 56  ;;  %4096 = vmatprep.subr.bf16.mxu1 (!%p3093_p0), %v4746_v3  ;;  %4168 = vmatprep.subr.bf16.mxu0 (!%p3093_p0), %v4746_v3  ;;  %v443_v4 = vand.u32 (!%p3093_p0), 4294901760, %v419_v0  ;;  %v446_v5 = vand.u32 (!%p3093_p0), 4294901760, %v420_v1  ;;  %v422_v6 = vld [vmem:[%s6154_s2 + $0x18] sm:$0xff] (!%p3093_p0)  ;;  %v449_v7 = vand.u32 (!%p3093_p0), 4294901760, %v421_v2  ;;  %1084 = vst [vmem:[#allocation3] sm:$0xff] (!%p3093_p0), %v4747_v8 }
  0x2b   : > { %v452_v9 = vand.u32 (!%p3093_p0), 4294901760, %v422_v6  ;;  %v423_v10 = vld [vmem:[%s6154_s2 + $0x20] sm:$0xff] (!%p3093_p0)  ;;  %v424_v11 = vld [vmem:[%s6154_s2 + $0x28] sm:$0xff] (!%p3093_p0)  ;;  %3468 = vmatprep.mubr.msk.f32.mxu1 (!%p3093_p0), %vm4748_vm0, %v4747_v8  ;;  %3573 = vmatprep.mubr.msk.f32.mxu0 (!%p3093_p0), %vm4748_vm0, %v4747_v8  ;;  %v425_v16 = vld [vmem:[%s6154_s2 + $0x30] sm:$0xff] (!%p3093_p0) }
  0x2c   : > { %v4938_v12 = vpack.c.bf16 (!%p3093_p0), %v446_v5, %v443_v4  ;;  %v455_v14 = vand.u32 (!%p3093_p0), 4294901760, %v423_v10  ;;  %v458_v15 = vand.u32 (!%p3093_p0), 4294901760, %v424_v11  ;;  %v426_v17 = vld [vmem:[%s6154_s2 + $0x38] sm:$0xff] (!%p3093_p0)  ;;  %v461_v19 = vand.u32 (!%p3093_p0), 4294901760, %v425_v16  ;;  %v4961_v21 = vld [vmem:[%s6154_s2 + $0x40] sm:$0xff] (!%p3093_p0)  ;;  %v4966_v22 = vld [vmem:[%s6154_s2 + $0x48] sm:$0xff] (!%p3093_p0) }
  0x2d   : > { %v4942_v13 = vpack.c.bf16 (!%p3093_p0), %v452_v9, %v449_v7  ;;  %v464_v20 = vand.u32 (!%p3093_p0), 4294901760, %v426_v17  ;;  %v467_v24 = vand.u32 (!%p3093_p0), 4294901760, %v4961_v21  ;;  %v470_v25 = vand.u32 (!%p3093_p0), 4294901760, %v4966_v22  ;;  %v418_v26 = vld [vmem:[%s4893_s15] sm:$0xff] (!%p3093_p0)  ;;  %v4980_v27 = vld [vmem:[%s6154_s2 + $0x50] sm:$0xff] (!%p3093_p0)  ;;  %v4985_v28 = vld [vmem:[%s6154_s2 + $0x58] sm:$0xff] (!%p3093_p0) }
  0x2e   : > { %4098 = vmatpush3.bf16.msra.mxu1 (!%p3093_p0), %v4938_v12  ;;  %4170 = vmatpush3.bf16.msra.mxu0 (!%p3093_p0), %v4938_v12  ;;  %v4954_v18 = vpack.c.bf16 (!%p3093_p0), %v458_v15, %v455_v14  ;;  %v4987_v29 = vsub.f32 (!%p3093_p0), %v419_v0, %v443_v4  ;;  %v4989_v30 = vand.u32 (!%p3093_p0), 4294901760, %v418_v26  ;;  %v4991_v31 = vsub.f32 (!%p3093_p0), %v420_v1, %v446_v5  ;;  %v5002_v35 = vld [vmem:[%s6154_s2 + $0x60] sm:$0xff] (!%p3093_p0)  ;;  %v5009_v36 = vld [vmem:[%s6154_s2 + $0x68] sm:$0xff] (!%p3093_p0)  ;;  %v5031_v43 = vld [vmem:[%s6154_s2 + $0x70] sm:$0xff] (!%p3093_p0) }
  0x2f   : > { %4099 = vmatprep.subr.bf16.mxu1 (!%p3093_p0), %v4746_v3  ;;  %4171 = vmatprep.subr.bf16.mxu0 (!%p3093_p0), %v4746_v3  ;;  %v4970_v23 = vpack.c.bf16 (!%p3093_p0), %v464_v20, %v461_v19  ;;  %v4995_v32 = vpack.c.bf16 (!%p3093_p0), %v470_v25, %v467_v24  ;;  %v473_v33 = vand.u32 (!%p3093_p0), 4294901760, %v4980_v27  ;;  %v476_v34 = vand.u32 (!%p3093_p0), 4294901760, %v4985_v28  ;;  %v5036_v44 = vld [vmem:[%s6154_s2 + $0x78] sm:$0xff] (!%p3093_p0) }
  0x30   : > { %v5011_v37 = vsub.f32 (!%p3093_p0), %v421_v2, %v449_v7  ;;  %v5013_v38 = vsub.f32 (!%p3093_p0), %v422_v6, %v452_v9  ;;  %v479_v39 = vand.u32 (!%p3093_p0), 4294901760, %v5002_v35  ;;  %v5017_v40 = vsub.f32 (!%p3093_p0), %v418_v26, %v4989_v30 }
  0x31   : > { %v5025_v41 = vpack.c.bf16 %v476_v34, %v473_v33  ;;  %v482_v42 = vand.u32 4294901760, %v5009_v36  ;;  %v536_v45 = vand.u32 4294901760, %v4987_v29  ;;  %v543_v46 = vand.u32 4294901760, %v4991_v31 }
  0x32   : > { %4101 = vmatpush3.bf16.msra.mxu1 %v4942_v13  ;;  %4173 = vmatpush3.bf16.msra.mxu0 %v4942_v13  ;;  %v5042_v47 = vsub.f32 %v423_v10, %v455_v14  ;;  %v5044_v48 = vsub.f32 %v424_v11, %v458_v15  ;;  %v485_v49 = vand.u32 4294901760, %v5031_v43  ;;  %v488_v50 = vand.u32 4294901760, %v5036_v44 }
  0x33   : > { %4102 = vmatprep.subr.bf16.mxu1 %v4746_v3  ;;  %4174 = vmatprep.subr.bf16.mxu0 %v4746_v3  ;;  %v525_v51 = vand.u32 4294901760, %v5017_v40  ;;  %v550_v52 = vand.u32 4294901760, %v5011_v37  ;;  %v5056_v53 = vpack.c.bf16 %v482_v42, %v479_v39  ;;  %v537_v54 = vsub.f32 %v4987_v29, %v536_v45 }
  0x34   : > { %v544_v55 = vsub.f32 %v4991_v31, %v543_v46  ;;  %v557_v56 = vand.u32 4294901760, %v5013_v38  ;;  %v5063_v57 = vsub.f32 %v425_v16, %v461_v19  ;;  %v5065_v58 = vsub.f32 %v426_v17, %v464_v20 }
  0x35   : > { %v526_v59 = vsub.f32 %v5017_v40, %v525_v51  ;;  %v551_v60 = vsub.f32 %v5011_v37, %v550_v52  ;;  %v564_v61 = vand.u32 4294901760, %v5042_v47  ;;  %v571_v62 = vand.u32 4294901760, %v5044_v48 }
  0x36   : > { %4104 = vmatpush3.bf16.msra.mxu1 %v4954_v18  ;;  %4176 = vmatpush3.bf16.msra.mxu0 %v4954_v18  ;;  %v5077_v63 = vpack.c.bf16 %v488_v50, %v485_v49  ;;  %v538_v0 = vand.u32 4294901760, %v537_v54  ;;  %v545_v1 = vand.u32 4294901760, %v544_v55  ;;  %v558_v2 = vsub.f32 %v5013_v38, %v557_v56 }
  0x37   : > { %4105 = vmatprep.subr.bf16.mxu1 %v4746_v3  ;;  %4177 = vmatprep.subr.bf16.mxu0 %v4746_v3  ;;  %v5083_v4 = vsub.f32 %v4961_v21, %v467_v24  ;;  %v5086_v5 = vsub.f32 %v4966_v22, %v470_v25  ;;  %v4193_v6 = vpack.c.bf16 %v543_v46, %v536_v45  ;;  %v527_v7 = vand.u32 4294901760, %v526_v59 }
  0x38   : > { %v552_v9 = vand.u32 4294901760, %v551_v60  ;;  %v565_v10 = vsub.f32 %v5042_v47, %v564_v61  ;;  %v572_v11 = vsub.f32 %v5044_v48, %v571_v62  ;;  %v4121_v14 = vpack.c.bf16 %v545_v1, %v538_v0 }
  0x39   : > { %v559_v15 = vand.u32 4294901760, %v558_v2  ;;  %v578_v16 = vand.u32 4294901760, %v5063_v57  ;;  %v585_v17 = vand.u32 4294901760, %v5065_v58  ;;  %v5099_v19 = vsub.f32 %v4980_v27, %v473_v33 }
  0x3a   : > { %4107 = vmatpush3.bf16.msra.mxu1 %v4970_v23  ;;  %4179 = vmatpush3.bf16.msra.mxu0 %v4970_v23  ;;  %v5104_v20 = vsub.f32 %v4985_v28, %v476_v34  ;;  %v4196_v21 = vpack.c.bf16 %v557_v56, %v550_v52  ;;  %v566_v22 = vand.u32 4294901760, %v565_v10  ;;  %v573_v24 = vand.u32 4294901760, %v572_v11 }
  0x3b   : > { %4108 = vmatprep.subr.bf16.mxu1 %v4746_v3  ;;  %4180 = vmatprep.subr.bf16.mxu0 %v4746_v3  ;;  %v592_v25 = vand.u32 4294901760, %v5083_v4  ;;  %v4124_v26 = vpack.c.bf16 %v559_v15, %v552_v9  ;;  %v579_v45 = vsub.f32 %v5063_v57, %v578_v16  ;;  %v586_v27 = vsub.f32 %v5065_v58, %v585_v17 }
  0x3c   : > { %v599_v33 = vand.u32 4294901760, %v5086_v5  ;;  %v5115_v28 = vsub.f32 %v5002_v35, %v479_v39  ;;  %v5120_v34 = vsub.f32 %v5009_v36, %v482_v42  ;;  %v4127_v46 = vpack.c.bf16 %v573_v24, %v566_v22 }
  0x3d   : > { %v593_v52 = vsub.f32 %v5083_v4, %v592_v25  ;;  %v606_v54 = vand.u32 4294901760, %v5099_v19  ;;  %v580_v35 = vand.u32 4294901760, %v579_v45  ;;  %v587_v39 = vand.u32 4294901760, %v586_v27 }
  0x3e   : > { %4110 = vmatpush3.bf16.msra.mxu1 %v4995_v32  ;;  %4182 = vmatpush3.bf16.msra.mxu0 %v4995_v32  ;;  %v600_v55 = vsub.f32 %v5086_v5, %v599_v33  ;;  %v613_v36 = vand.u32 4294901760, %v5104_v20  ;;  %v5135_v42 = vsub.f32 %v5031_v43, %v485_v49  ;;  %v5140_v56 = vsub.f32 %v5036_v44, %v488_v50 }
  0x3f   : > { %4111 = vmatprep.subr.bf16.mxu1 %v4746_v3  ;;  %4183 = vmatprep.subr.bf16.mxu0 %v4746_v3  ;;  %v4202_v59 = vpack.c.bf16 %v585_v17, %v578_v16  ;;  %v594_v60 = vand.u32 4294901760, %v593_v52  ;;  %v4130_v0 = vpack.c.bf16 %v587_v39, %v580_v35  ;;  %v627_v43 = vand.u32 4294901760, %v5120_v34 }
  0x40   : > { %v601_v1 = vand.u32 4294901760, %v600_v55  ;;  %v614_v2 = vsub.f32 %v5104_v20, %v613_v36  ;;  %v4205_v44 = vpack.c.bf16 %v599_v33, %v592_v25  ;;  %v641_v11 = vand.u32 4294901760, %v5140_v56 }
  0x41   : > { %v628_v10 = vsub.f32 %v5120_v34, %v627_v43 }
  0x42   : > { %4113 = vmatpush3.bf16.msra.mxu1 %v5025_v41  ;;  %4185 = vmatpush3.bf16.msra.mxu0 %v5025_v41  ;;  %v615_v9 = vand.u32 4294901760, %v614_v2  ;;  %v642_v22 = vsub.f32 %v5140_v56, %v641_v11 }
  0x43   : > { %4114 = vmatprep.subr.bf16.mxu1 %v4746_v3  ;;  %4186 = vmatprep.subr.bf16.mxu0 %v4746_v3  ;;  %v629_v17 = vand.u32 4294901760, %v628_v10 }
  0x44   : > { %v643_v45 = vand.u32 4294901760, %v642_v22 }
  0x46   : > { %4116 = vmatpush3.bf16.msra.mxu1 %v5056_v53  ;;  %4188 = vmatpush3.bf16.msra.mxu0 %v5056_v53 }
  0x47   : > { %4117 = vmatprep.subr.bf16.mxu1 %v4746_v3  ;;  %4189 = vmatprep.subr.bf16.mxu0 %v4746_v3 }
  0x4a   : > { %4119 = vmatpush3.bf16.msra.mxu1 %v5077_v63  ;;  %4191 = vmatpush3.bf16.msra.mxu0 %v5077_v63 }
  0x4b   : > { %4120 = vmatprep.subr.bf16.mxu1 %v4746_v3  ;;  %4192 = vmatprep.subr.bf16.mxu0 %v4746_v3 }
  0x4d   : > { %3469 = vmatmul.mubr.f32.vlgmr.msra.gmra.mrb[0].mxu1 %v527_v7  ;;  %3574 = vmatmul.mubr.f32.vlgmr.msra.gmra.mrb[0].mxu0 %v525_v51  ;;  %v4199_v51 = vpack.c.bf16 %v571_v62, %v564_v61  ;;  %v607_v61 = vsub.f32 %v5099_v19, %v606_v54  ;;  %v620_v62 = vand.u32 4294901760, %v5115_v28  ;;  %v4133_v7 = vpack.c.bf16 %v601_v1, %v594_v60 }
  0x4e   : > { %4122 = vmatpush3.bf16.msra.mxu1 %v4121_v14  ;;  %4194 = vmatpush3.bf16.msra.mxu0 %v4193_v6  ;;  %v634_v6 = vand.u32 4294901760, %v5135_v42  ;;  %v4208_v14 = vpack.c.bf16 %v613_v36, %v606_v54 }
  0x4f   : > { %4123 = vmatprep.subr.bf16.mxu1 %v4746_v3  ;;  %4195 = vmatprep.subr.bf16.mxu0 %v4746_v3  ;;  %v608_v49 = vand.u32 4294901760, %v607_v61  ;;  %v621_v50 = vsub.f32 %v5115_v28, %v620_v62  ;;  %v4211_v25 = vpack.c.bf16 %v627_v43, %v620_v62 }
  0x50   : > { %3503 = vmatprep.mubr.msk.f32.mxu1 %vm4748_vm0, %v4747_v8  ;;  %3608 = vmatprep.mubr.msk.f32.mxu0 %vm4748_vm0, %v4747_v8  ;;  %v4214_v33 = vpack.c.bf16 %v641_v11, %v634_v6 }
  0x51   : > { %v622_v15 = vand.u32 4294901760, %v621_v50  ;;  %v4136_v16 = vpack.c.bf16 %v615_v9, %v608_v49 }
  0x52   : > { %4125 = vmatpush3.bf16.msra.mxu1 %v4124_v26  ;;  %4197 = vmatpush3.bf16.msra.mxu0 %v4196_v21  ;;  %v635_v21 = vsub.f32 %v5135_v42, %v634_v6 }
  0x53   : > { %4126 = vmatprep.subr.bf16.mxu1 %v4746_v3  ;;  %4198 = vmatprep.subr.bf16.mxu0 %v4746_v3  ;;  %v4139_v24 = vpack.c.bf16 %v629_v17, %v622_v15 }
  0x54   : > { %v636_v26 = vand.u32 4294901760, %v635_v21 }
  0x56   : > { %4128 = vmatpush3.bf16.msra.mxu1 %v4127_v46  ;;  %4200 = vmatpush3.bf16.msra.mxu0 %v4199_v51  ;;  %v4142_v27 = vpack.c.bf16 %v643_v45, %v636_v26  ;;  %v4145_v46 = vpack.c.bf16 %v4991_v31, %v4987_v29  ;;  %v4148_v51 = vpack.c.bf16 %v5013_v38, %v5011_v37  ;;  %v3094_v31 = vld [vmem:[%s6155_s3] ss:$0 sm:$0xff] }
  0x57   : > { %4129 = vmatprep.subr.bf16.mxu1 %v4746_v3  ;;  %4201 = vmatprep.subr.bf16.mxu0 %v4746_v3  ;;  %v4151_v29 = vpack.c.bf16 %v5044_v48, %v5042_v47 }
  0x5a   : > { %4131 = vmatpush3.bf16.msra.mxu1 %v4130_v0  ;;  %4203 = vmatpush3.bf16.msra.mxu0 %v4202_v59 }
  0x5b   : > { %4132 = vmatprep.subr.bf16.mxu1 %v4746_v3  ;;  %4204 = vmatprep.subr.bf16.mxu0 %v4746_v3 }
  0x5e   : > { %4134 = vmatpush3.bf16.msra.mxu1 %v4133_v7  ;;  %4206 = vmatpush3.bf16.msra.mxu0 %v4205_v44 }
  0x5f   : > { %4135 = vmatprep.subr.bf16.mxu1 %v4746_v3  ;;  %4207 = vmatprep.subr.bf16.mxu0 %v4746_v3 }
  0x62   : > { %4137 = vmatpush3.bf16.msra.mxu1 %v4136_v16  ;;  %4209 = vmatpush3.bf16.msra.mxu0 %v4208_v14 }
  0x63   : > { %4138 = vmatprep.subr.bf16.mxu1 %v4746_v3  ;;  %4210 = vmatprep.subr.bf16.mxu0 %v4746_v3 }
  0x66   : > { %4140 = vmatpush3.bf16.msra.mxu1 %v4139_v24  ;;  %4212 = vmatpush3.bf16.msra.mxu0 %v4211_v25 }
  0x67   : > { %4141 = vmatprep.subr.bf16.mxu1 %v4746_v3  ;;  %4213 = vmatprep.subr.bf16.mxu0 %v4746_v3 }
  0x6a   : > { %4143 = vmatpush3.bf16.msra.mxu1 %v4142_v27  ;;  %4215 = vmatpush3.bf16.msra.mxu0 %v4214_v33 }
  0x6b   : > { %4144 = vmatprep.subr.bf16.mxu1 %v4746_v3  ;;  %4216 = vmatprep.subr.bf16.mxu0 %v4746_v3 }
  0x6d   : > { %3504 = vmatmul.mubr.f32.vlgmr.msra.gmra.mrb[0].mxu1 %v4989_v30  ;;  %3609 = vmatmul.mubr.f32.vlgmr.msra.gmra.mrb[0].mxu0 %v4989_v30 }
  0x6e   : > { %4146 = vmatpush3.bf16.msra.mxu1 %v4145_v46  ;;  %4218 = vmatpush3.bf16.msra.mxu0 %v4938_v12  ;;  %v4154_v12 = vpack.c.bf16 %v5065_v58, %v5063_v57 }
  0x6f   : > { %4147 = vmatprep.subr.bf16.mxu1 %v4746_v3  ;;  %4219 = vmatprep.subr.bf16.mxu0 %v4746_v3 }
  0x70   : > { %3538 = vmatprep.mubr.msk.f32.mxu1 %vm4748_vm0, %v4747_v8  ;;  %3643 = vmatprep.mubr.msk.f32.mxu0 %vm4748_vm0, %v4747_v8  ;;  %v4157_v8 = vpack.c.bf16 %v5086_v5, %v5083_v4 }
  0x72   : > { %4149 = vmatpush3.bf16.msra.mxu1 %v4148_v51  ;;  %4221 = vmatpush3.bf16.msra.mxu0 %v4942_v13  ;;  %v4160_v13 = vpack.c.bf16 %v5104_v20, %v5099_v19 }
  0x73   : > { %4150 = vmatprep.subr.bf16.mxu1 %v4746_v3  ;;  %4222 = vmatprep.subr.bf16.mxu0 %v4746_v3 }
  0x76   : > { %4152 = vmatpush3.bf16.msra.mxu1 %v4151_v29  ;;  %4224 = vmatpush3.bf16.msra.mxu0 %v4954_v18  ;;  %v4163_v18 = vpack.c.bf16 %v5120_v34, %v5115_v28 }
  0x77   : > { %4153 = vmatprep.subr.bf16.mxu1 %v4746_v3  ;;  %4225 = vmatprep.subr.bf16.mxu0 %v4746_v3 }
  0x7a   : > { %4155 = vmatpush3.bf16.msra.mxu1 %v4154_v12  ;;  %4227 = vmatpush3.bf16.msra.mxu0 %v4970_v23  ;;  %v4166_v23 = vpack.c.bf16 %v5140_v56, %v5135_v42 }
  0x7b   : > { %4156 = vmatprep.subr.bf16.mxu1 %v4746_v3  ;;  %4228 = vmatprep.subr.bf16.mxu0 %v4746_v3 }
  0x7e   : > { %4158 = vmatpush3.bf16.msra.mxu1 %v4157_v8  ;;  %4230 = vmatpush3.bf16.msra.mxu0 %v4995_v32 }
  0x7f   : > { %4159 = vmatprep.subr.bf16.mxu1 %v4746_v3  ;;  %4231 = vmatprep.subr.bf16.mxu0 %v4746_v3 }
  0x82   : > { %4161 = vmatpush3.bf16.msra.mxu1 %v4160_v13  ;;  %4233 = vmatpush3.bf16.msra.mxu0 %v5025_v41 }
  0x83   : > { %4162 = vmatprep.subr.bf16.mxu1 %v4746_v3  ;;  %4234 = vmatprep.subr.bf16.mxu0 %v4746_v3 }
  0x86   : > { %4164 = vmatpush3.bf16.msra.mxu1 %v4163_v18  ;;  %4236 = vmatpush3.bf16.msra.mxu0 %v5056_v53 }
  0x87   : > { %4165 = vmatprep.subr.bf16.mxu1 %v4746_v3  ;;  %4237 = vmatprep.subr.bf16.mxu0 %v4746_v3 }
  0x8a   : > { %4167 = vmatpush3.bf16.msra.mxu1 %v4166_v23  ;;  %4239 = vmatpush3.bf16.msra.mxu0 %v5077_v63 }
  0x8d   : > { %3539 = vmatmul.mubr.f32.vlgmr.msra.gmra.mrb[0].mxu1 %v5017_v40  ;;  %3644 = vmatmul.mubr.f32.vlgmr.msra.gmra.mrb[0].mxu0 %v4989_v30 }
 0x160   : > { %v784_v32 = vpop.f32.mrb[0].mxu1  ;;  %v1079_v37 = vpop.f32.mrb[0].mxu0 }
 0x161   : > { %v4528_v38 = vadd.f32 %v3094_v31, %v784_v32  ;;  %v3540_v41 = vpop.f32.mrb[1].mxu1  ;;  %v3645_v47 = vpop.f32.mrb[1].mxu0 }
 0x163   : > { %v4529_v48 = vadd.f32 %v4528_v38, %v1079_v37 }
 0x165   : > { %1083 = vst [vmem:[#allocation2] sm:$0xff] %v4529_v48 }
 0x166 PF: > { %v1086_v3 = vld [vmem:[%s4909_s19] sm:$0xff]  ;;  %v1113_v30 = vld [vmem:[%s6157_s5 + $0x8] sm:$0xff]  ;;  %v4749_v53 = vmov 0   ;;  %v6190_v57 = vmov 0.0|0.0   ;;  %v5224_v4 = vld [vmem:[%s6157_s5 + $0x10] sm:$0xff]  ;;  %v4751_v0 = vmov 1  }
 0x167   : > { %v1112_v40 = vld [vmem:[%s6157_s5] sm:$0xff]  ;;  %4642 = vset.pattern.permute.xlu0 %v4749_v53  ;;  %4240 = vmatprep.subr.bf16.mxu1 %v6190_v57  ;;  %v1132_v63 = vand.u32 4294901760, %v1113_v30  ;;  %v5229_v5 = vld [vmem:[%s6157_s5 + $0x18] sm:$0xff]  ;;  %v1135_v19 = vand.u32 4294901760, %v5224_v4  ;;  %v5241_v28 = vld [vmem:[%s6157_s5 + $0x88] sm:$0xff]  ;;  %vm4752_vm1 = vmmov 0  }
 0x168   : > { %v1129_v58 = vand.u32 4294901760, %v1112_v40  ;;  %1099 = vperm.xlu0 %4642, %v1086_v3   ;;  %4384 = vmatprep.subr.bf16.mxu0 %v6190_v57  ;;  %v5236_v20 = vld [vmem:[%s6157_s5 + $0x80] sm:$0xff]  ;;  %v1138_v35 = vand.u32 4294901760, %v5229_v5  ;;  %v1805_v55 = vand.u32 4294901760, %v5241_v28  ;;  %v5260_v42 = vld [vmem:[%s6157_s5 + $0x28] sm:$0xff]  ;;  %v5274_v61 = vld [vmem:[%s6157_s5 + $0x90] sm:$0xff] }
 0x169   : > { %v5247_v54 = vsub.f32 %v1113_v30, %v1132_v63  ;;  %v1802_v39 = vand.u32 4294901760, %v5236_v20  ;;  %v5255_v36 = vld [vmem:[%s6157_s5 + $0x20] sm:$0xff]  ;;  %v6185_v60 = vand.u32 4294901760, %v5260_v42  ;;  %v5279_v62 = vld [vmem:[%s6157_s5 + $0x98] sm:$0xff]  ;;  %v6184_v2 = vand.u32 4294901760, %v5274_v61  ;;  %v5294_v44 = vld [vmem:[%s6157_s5 + $0x30] sm:$0xff] }
 0x16a   : > { %v5243_v34 = vpack.c.bf16 %v1132_v63, %v1129_v58  ;;  %v5245_v52 = vsub.f32 %v1112_v40, %v1129_v58  ;;  %v5267_v56 = vpack.c.bf16 %v1138_v35, %v1135_v19  ;;  %v1141_v59 = vand.u32 4294901760, %v5255_v36  ;;  %v5299_v49 = vld [vmem:[%s6157_s5 + $0x38] sm:$0xff]  ;;  %v5320_v10 = vld [vmem:[%s6157_s5 + $0xa0] sm:$0xff]  ;;  %v5325_v11 = vld [vmem:[%s6157_s5 + $0xa8] sm:$0xff]  ;;  %p3112_p1 = scmp.ne.s32.totalorder %s4728_s12, 2 }
 0x16b   : > { %v5286_v1 = vpack.c.bf16 %v1805_v55, %v1802_v39  ;;  %v6183_v43 = vand.u32 4294901760, %v5279_v62  ;;  %v6182_v7 = vand.u32 4294901760, %v5294_v44  ;;  %v6181_v9 = vand.u32 4294901760, %v5299_v49  ;;  %v5340_v17 = vld [vmem:[%s6157_s5 + $0x40] sm:$0xff]  ;;  %v5345_v21 = vld [vmem:[%s6157_s5 + $0x48] sm:$0xff]  ;;  %v5360_v26 = vld [vmem:[%s6157_s5 + $0xb0] sm:$0xff]  ;;  %s6384_s23 = scalar_lea.vmem (!%p3112_p1), %s6161_s9, %s4882_s28 }
 0x16c   : > { %6279 = vst [vmem:[#allocation18_spill] sm:$0xff] %v5243_v34  ;;  %4242 = vmatpush3.bf16.msra.mxu1 %v5243_v34  ;;  %6280 = vst [vmem:[#allocation19_spill] sm:$0xff] %v5267_v56  ;;  %4643 = vset.pattern.permute.xlu0 %v4751_v0  ;;  %v5306_v50 = vpack.c.bf16 %v6185_v60, %v1141_v59  ;;  %v6180_v14 = vand.u32 4294901760, %v5320_v10  ;;  %v6179_v15 = vand.u32 4294901760, %v5325_v11  ;;  %v6178_v24 = vand.u32 4294901760, %v5340_v17  ;;  %v5365_v45 = vld [vmem:[%s6157_s5 + $0xb8] sm:$0xff] }
 0x16d   : > { %4243 = vmatprep.subr.bf16.mxu1 %v6190_v57  ;;  %6281 = vst [vmem:[#allocation20_spill] sm:$0xff] %v5286_v1  ;;  %1771 = vperm.xlu0 %4643, %v1086_v3   ;;  %v5313_v6 = vpack.c.bf16 %v6183_v43, %v6184_v2  ;;  %v5352_v22 = vpack.c.bf16 %v6181_v9, %v6182_v7  ;;  %v6177_v25 = vand.u32 4294901760, %v5345_v21  ;;  %v6176_v27 = vand.u32 4294901760, %v5360_v26  ;;  %v5380_v51 = vld [vmem:[%s6157_s5 + $0x50] sm:$0xff]  ;;  %v5385_v29 = vld [vmem:[%s6157_s5 + $0x58] sm:$0xff]  ;;  %v3104_v18 = vld [vmem:[%s6157_s5 + $0xc0] sm:$0xff] }
 0x16e   : > { %4386 = vmatpush3.bf16.msra.mxu0 %v5286_v1  ;;  %6282 = vst [vmem:[#allocation21_spill] sm:$0xff] %v5306_v50  ;;  %v5335_v16 = vpack.c.bf16 %v6179_v15, %v6180_v14  ;;  %v6175_v33 = vand.u32 4294901760, %v5365_v45  ;;  %v1159_v8 = vand.u32 4294901760, %v5380_v51  ;;  %v1162_v13 = vand.u32 4294901760, %v5385_v29  ;;  %v3105_v23 = vld [vmem:[%s6157_s5 + $0xc8] sm:$0xff]  ;;  %v1124_v38 = vld [vmem:[%s6157_s5 + $0x60] sm:$0xff] }
 0x16f   : > { %4387 = vmatprep.subr.bf16.mxu0 %v6190_v57  ;;  %6283 = vst [vmem:[#allocation22_spill] sm:$0xff] %v5313_v6  ;;  %6285 = vst [vmem:[#allocation24_spill] sm:$0xff] %v5352_v22  ;;  %v5392_v12 = vpack.c.bf16 %v6177_v25, %v6178_v24  ;;  %v1826_v31 = vand.u32 4294901760, %v3104_v18  ;;  %v1829_v32 = vand.u32 4294901760, %v3105_v23  ;;  %v1125_v41 = vld [vmem:[%s6157_s5 + $0x68] sm:$0xff]  ;;  %v1165_v48 = vand.u32 4294901760, %v1124_v38 }
 0x170   : > { %4245 = vmatpush3.bf16.msra.mxu1 %v5267_v56  ;;  %6284 = vst [vmem:[#allocation23_spill] sm:$0xff] %v5335_v16  ;;  %v5375_v46 = vpack.c.bf16 %v6175_v33, %v6176_v27  ;;  %v5414_v47 = vpack.c.bf16 %v1162_v13, %v1159_v8  ;;  %v1168_v3 = vand.u32 4294901760, %v1125_v41  ;;  %v3106_v40 = vld [vmem:[%s6157_s5 + $0xd0] sm:$0xff]  ;;  %v3107_v30 = vld [vmem:[%s6157_s5 + $0xd8] sm:$0xff]  ;;  %v5438_v25 = vsub.f32 %v5224_v4, %v1135_v19  ;;  %v3108_v4 = vld [vmem:[%s6157_s5 + $0xe0] sm:$0xff] }
 0x171   : > { %4246 = vmatprep.subr.bf16.mxu1 %v6190_v57  ;;  %6287 = vst [vmem:[#allocation26_spill] sm:$0xff] %v5392_v12  ;;  %v5405_v37 = vpack.c.bf16 %v1829_v32, %v1826_v31  ;;  %v1832_v53 = vand.u32 4294901760, %v3106_v40  ;;  %v1835_v58 = vand.u32 4294901760, %v3107_v30  ;;  %v1126_v33 = vld [vmem:[%s6157_s5 + $0x70] sm:$0xff]  ;;  %v1127_v27 = vld [vmem:[%s6157_s5 + $0x78] sm:$0xff]  ;;  %v5443_v24 = vsub.f32 %v5229_v5, %v1138_v35  ;;  %v3109_v5 = vld [vmem:[%s6157_s5 + $0xe8] sm:$0xff] }
 0x172   : > { %4389 = vmatpush3.bf16.msra.mxu0 %v5313_v6  ;;  %6286 = vst [vmem:[#allocation25_spill] sm:$0xff] %v5375_v46  ;;  %6289 = vst [vmem:[#allocation28_spill] sm:$0xff] %v5414_v47  ;;  %v5425_v63 = vpack.c.bf16 %v1168_v3, %v1165_v48  ;;  %v5448_v15 = vsub.f32 %v5236_v20, %v1802_v39  ;;  %v5453_v14 = vsub.f32 %v5241_v28, %v1805_v55  ;;  %vm2451_vm2 = vcmask 1045504  }
 0x173   : > { %4390 = vmatprep.subr.bf16.mxu0 %v6190_v57  ;;  %6288 = vst [vmem:[#allocation27_spill] sm:$0xff] %v5405_v37  ;;  %v5427_v0 = vpack.c.bf16 %v1835_v58, %v1832_v53  ;;  %v1171_v19 = vand.u32 4294901760, %v1126_v33  ;;  %v1174_v20 = vand.u32 4294901760, %v1127_v27  ;;  %v1838_v35 = vand.u32 4294901760, %v3108_v4 }
 0x174   : > { %4248 = vmatpush3.bf16.msra.mxu1 %v5306_v50  ;;  %6290 = vst [vmem:[#allocation29_spill] sm:$0xff] %v5425_v63  ;;  %v1841_v39 = vand.u32 4294901760, %v3109_v5  ;;  %v6194_v28 = vand.u32 4294901760, %v5245_v52  ;;  %v6197_v55 = vand.u32 4294901760, %v5247_v54  ;;  %v5482_v60 = vsub.f32 %v5255_v36, %v1141_v59 }
 0x175   : > { %4249 = vmatprep.subr.bf16.mxu1 %v6190_v57  ;;  %6291 = vst [vmem:[#allocation30_spill] sm:$0xff] %v5427_v0  ;;  %v5470_v7 = vpack.c.bf16 %v1174_v20, %v1171_v19  ;;  %v6298_v36 = vand.u32 4294901760, %v5294_v44  ;;  %vm2447_vm3 = vcmask 48128   ;;  %vm2930_vm5 = vcmask (!%p3112_p1), 0  }
 0x176   : > { %4392 = vmatpush3.bf16.msra.mxu0 %v5335_v16  ;;  %v5467_v9 = vpack.c.bf16 %v1841_v39, %v1838_v35  ;;  %v1223_v43 = vsub.f32 %v5245_v52, %v6194_v28  ;;  %v1230_v2 = vsub.f32 %v5247_v54, %v6197_v55  ;;  %v6296_v28 = vand.u32 4294901760, %v5279_v62 }
 0x177   : > { %4393 = vmatprep.subr.bf16.mxu0 %v6190_v57  ;;  %6293 = vst [vmem:[#allocation32_spill] sm:$0xff] %v5470_v7  ;;  %v6297_v55 = vmov 0.0|0.0   ;;  %v5503_v59 = vsub.f32 %v5294_v44, %v6298_v36  ;;  %v6303_v36 = vand.u32 4294901760, %v5345_v21 }
 0x178   : > { %4251 = vmatpush3.bf16.msra.mxu1 %v5352_v22  ;;  %6292 = vst [vmem:[#allocation31_spill] sm:$0xff] %v5467_v9 }
 0x179   : > { %4252 = vmatprep.subr.bf16.mxu1 %v6190_v57 }
 0x17a   : > { %4395 = vmatpush3.bf16.msra.mxu0 %v5375_v46  ;;  %v6302_v46 = vand.u32 4294901760, %v5340_v17 }
 0x17b   : > { %4396 = vmatprep.subr.bf16.mxu0 %v6190_v57 }
 0x17c   : > { %4254 = vmatpush3.bf16.msra.mxu1 %v5392_v12  ;;  %v5523_v44 = vsub.f32 %v5340_v17, %v6302_v46  ;;  %v5542_v17 = vsub.f32 %v5380_v51, %v1159_v8  ;;  %v5545_v46 = vsub.f32 %v5385_v29, %v1162_v13  ;;  %v3110_v51 = vld [vmem:[%s6157_s5 + $0xf0] sm:$0xff]  ;;  %v3111_v29 = vld [vmem:[%s6157_s5 + $0xf8] sm:$0xff]  ;;  %v5567_v8 = vsub.f32 %v1126_v33, %v1171_v19 }
 0x17d   : > { %4255 = vmatprep.subr.bf16.mxu1 %v6190_v57  ;;  %v5569_v13 = vsub.f32 %v1127_v27, %v1174_v20  ;;  %v6205_v33 = vand.u32 4294901760, %v5438_v25  ;;  %v6203_v27 = vand.u32 4294901760, %v5443_v24 }
 0x17e   : > { %4398 = vmatpush3.bf16.msra.mxu0 %v5405_v37  ;;  %6306 = vst [vmem:[#allocation33_spill] sm:$0xff] %v5567_v8 }
 0x17f   : > { %4399 = vmatprep.subr.bf16.mxu0 %v6190_v57 }
 0x180   : > { %4257 = vmatpush3.bf16.msra.mxu1 %v5414_v47  ;;  %v5497_v47 = vsub.f32 %v5279_v62, %v6296_v28  ;;  %v6301_v62 = vand.u32 4294901760, %v5325_v11 }
 0x181   : > { %4258 = vmatprep.subr.bf16.mxu1 %v6190_v57 }
 0x182   : > { %4401 = vmatpush3.bf16.msra.mxu0 %v5427_v0  ;;  %v6294_v0 = vand.u32 4294901760, %v5260_v42  ;;  %v5518_v28 = vsub.f32 %v5325_v11, %v6301_v62  ;;  %v5549_v62 = vsub.f32 %v3105_v23, %v1829_v32  ;;  %v5573_v23 = vsub.f32 %v3109_v5, %v1841_v39 }
 0x183   : > { %4402 = vmatprep.subr.bf16.mxu0 %v6190_v57  ;;  %v6295_v57 = vand.u32 4294901760, %v5274_v61  ;;  %v1231_v32 = vand.u32 4294901760, %v1230_v2  ;;  %v6200_v2 = vand.u32 4294901760, %v5453_v14  ;;  %v1244_v5 = vsub.f32 %v5443_v24, %v6203_v27 }
 0x184   : > { %4260 = vmatpush3.bf16.msra.mxu1 %v5425_v63  ;;  %v5487_v63 = vsub.f32 %v5260_v42, %v6294_v0  ;;  %v6299_v42 = vand.u32 4294901760, %v5299_v49  ;;  %6308 = vst [vmem:[#allocation35_spill] sm:$0xff] %v5573_v23 }
 0x185   : > { %v5492_v37 = vsub.f32 %v5274_v61, %v6295_v57  ;;  %4261 = vmatprep.subr.bf16.mxu1 %v6297_v55  ;;  %v6300_v57 = vand.u32 4294901760, %v5320_v10  ;;  %v1903_v20 = vsub.f32 %v5453_v14, %v6200_v2 }
 0x186   : > { %v5508_v0 = vsub.f32 %v5299_v49, %v6299_v42  ;;  %v5528_v49 = vsub.f32 %v5345_v21, %v6303_v36  ;;  %v6304_v42 = vand.u32 4294901760, %v5360_v26  ;;  %4404 = vmatpush3.bf16.msra.mxu0 %v5467_v9  ;;  %v5547_v21 = vsub.f32 %v3104_v18, %v1826_v31 }
 0x187   : > { %v5513_v61 = vsub.f32 %v5320_v10, %v6300_v57  ;;  %v6305_v57 = vand.u32 4294901760, %v5365_v45  ;;  %v5554_v36 = vsub.f32 %v1125_v41, %v1168_v3  ;;  %v5571_v18 = vsub.f32 %v3108_v4, %v1838_v35  ;;  %4405 = vmatprep.subr.bf16.mxu0 %v6297_v55 }
 0x188   : > { %v5533_v10 = vsub.f32 %v5360_v26, %v6304_v42  ;;  %4263 = vmatpush3.bf16.msra.mxu1 %v5470_v7  ;;  %v5552_v26 = vsub.f32 %v1124_v38, %v1165_v48  ;;  %v5558_v42 = vsub.f32 %v3107_v30, %v1835_v58  ;;  %v1224_v31 = vand.u32 4294901760, %v1223_v43 }
 0x189   : > { %v5538_v11 = vsub.f32 %v5365_v45, %v6305_v57  ;;  %v5556_v45 = vsub.f32 %v3106_v40, %v1832_v53  ;;  %4264 = vmatprep.subr.bf16.mxu1 %v6297_v55  ;;  %6307 = vst [vmem:[#allocation34_spill] sm:$0xff] %v5571_v18  ;;  %v6209_v38 = vmov 0.0   ;;  %v1844_v41 = vand.u32 4294901760, %v3110_v51 }
 0x18a   : > { %3678 = vmatprep.mubr.msk.f32.mxu1 %vm4752_vm1, %v6209_v38  ;;  %v1847_v48 = vand.u32 4294901760, %v3111_v29  ;;  %3888 = vmatprep.mubr.msk.f32.mxu0 %vm4752_vm1, %v6209_v38  ;;  %v5582_v3 = vpack.c.bf16 %v1231_v32, %v1224_v31  ;;  %v6202_v40 = vand.u32 4294901760, %v5448_v15  ;;  %v6201_v43 = vand.u32 4294901760, %v5482_v60 }
 0x18b   : > { %v5589_v53 = vsub.f32 %v3110_v51, %v1844_v41  ;;  %v1237_v4 = vsub.f32 %v5438_v25, %v6205_v33  ;;  %v6204_v57 = vand.u32 4294901760, %v5487_v63  ;;  %v6206_v51 = vand.u32 4294901760, %v5492_v37 }
 0x18c   : > { %v5587_v30 = vpack.c.bf16 %v1847_v48, %v1844_v41  ;;  %v5591_v58 = vsub.f32 %v3111_v29, %v1847_v48  ;;  %v1896_v19 = vsub.f32 %v5448_v15, %v6202_v40  ;;  %v1251_v35 = vsub.f32 %v5482_v60, %v6201_v43 }
 0x18d   : > { %6310 = vst [vmem:[#allocation37_spill] sm:$0xff] %v5589_v53  ;;  %v1238_v39 = vand.u32 4294901760, %v1237_v4  ;;  %v6207_v29 = vand.u32 4294901760, %v5497_v47  ;;  %v1245_v31 = vand.u32 4294901760, %v1244_v5  ;;  %v1904_v41 = vand.u32 4294901760, %v1903_v20 }
 0x18e   : > { %6309 = vst [vmem:[#allocation36_spill] sm:$0xff] %v5587_v30  ;;  %6311 = vst [vmem:[#allocation38_spill] sm:$0xff] %v5591_v58  ;;  %4407 = vmatpush3.bf16.msra.mxu0 %v5587_v30  ;;  %v1897_v32 = vand.u32 4294901760, %v1896_v19  ;;  %v1252_v48 = vand.u32 4294901760, %v1251_v35  ;;  %v1258_v2 = vsub.f32 %v5487_v63, %v6204_v57  ;;  %v1910_v4 = vsub.f32 %v5492_v37, %v6206_v51 }
 0x18f   : > { %4408 = vmatprep.subr.bf16.mxu0 %v6297_v55  ;;  %v1917_v43 = vsub.f32 %v5497_v47, %v6207_v29  ;;  %v6208_v40 = vand.u32 4294901760, %v5503_v59  ;;  %v5623_v5 = vpack.c.bf16 %v1245_v31, %v1238_v39  ;;  %v6211_v19 = vand.u32 4294901760, %v5508_v0 }
 0x190   : > { %v5625_v27 = vpack.c.bf16 %v1904_v41, %v1897_v32  ;;  %v6212_v20 = vand.u32 4294901760, %v5513_v61  ;;  %v1259_v35 = vand.u32 4294901760, %v1258_v2  ;;  %v1911_v57 = vand.u32 4294901760, %v1910_v4 }
 0x191   : > { %v1918_v33 = vand.u32 4294901760, %v1917_v43  ;;  %v1265_v51 = vsub.f32 %v5503_v59, %v6208_v40  ;;  %v1272_v29 = vsub.f32 %v5508_v0, %v6211_v19  ;;  %v6213_v31 = vand.u32 4294901760, %v5518_v28 }
 0x192   : > { %v1924_v39 = vsub.f32 %v5513_v61, %v6212_v20  ;;  %v6216_v32 = vand.u32 4294901760, %v5523_v44  ;;  %v5640_v41 = vpack.c.bf16 %v1259_v35, %v1252_v48  ;;  %v6217_v4 = vand.u32 4294901760, %v5528_v49 }
 0x193   : > { %v5642_v2 = vpack.c.bf16 %v1918_v33, %v1911_v57  ;;  %v1266_v43 = vand.u32 4294901760, %v1265_v51  ;;  %v1273_v40 = vand.u32 4294901760, %v1272_v29  ;;  %v1931_v19 = vsub.f32 %v5518_v28, %v6213_v31 }
 0x194   : > { %v1925_v38 = vand.u32 4294901760, %v1924_v39  ;;  %v1279_v20 = vsub.f32 %v5523_v44, %v6216_v32  ;;  %v1286_v48 = vsub.f32 %v5528_v49, %v6217_v4  ;;  %v6222_v33 = vand.u32 4294901760, %v5533_v10 }
 0x195   : > { %v6225_v57 = vand.u32 4294901760, %v5538_v11  ;;  %v6226_v51 = vand.u32 4294901760, %v5542_v17  ;;  %v5657_v29 = vpack.c.bf16 %v1273_v40, %v1266_v43  ;;  %v1932_v35 = vand.u32 4294901760, %v1931_v19 }
 0x196   : > { %v1280_v39 = vand.u32 4294901760, %v1279_v20  ;;  %v6227_v31 = vand.u32 4294901760, %v5545_v46  ;;  %v1287_v30 = vand.u32 4294901760, %v1286_v48  ;;  %v1938_v32 = vsub.f32 %v5533_v10, %v6222_v33 }
 0x197   : > { %v1945_v4 = vsub.f32 %v5538_v11, %v6225_v57  ;;  %v1293_v9 = vsub.f32 %v5542_v17, %v6226_v51  ;;  %v5669_v7 = vpack.c.bf16 %v1932_v35, %v1925_v38  ;;  %v6232_v19 = vand.u32 4294901760, %v5547_v21 }
 0x198   : > { %v1300_v40 = vsub.f32 %v5545_v46, %v6227_v31  ;;  %v6230_v20 = vand.u32 4294901760, %v5549_v62  ;;  %v5676_v43 = vpack.c.bf16 %v1287_v30, %v1280_v39  ;;  %v1939_v48 = vand.u32 4294901760, %v1938_v32 }
 0x199   : > { %v1946_v33 = vand.u32 4294901760, %v1945_v4  ;;  %v1294_v12 = vand.u32 4294901760, %v1293_v9  ;;  %v1952_v51 = vsub.f32 %v5547_v21, %v6232_v19  ;;  %v6231_v35 = vand.u32 4294901760, %v5552_v26 }
 0x19a   : > { %v1301_v57 = vand.u32 4294901760, %v1300_v40  ;;  %v1959_v38 = vsub.f32 %v5549_v62, %v6230_v20  ;;  %v6235_v16 = vand.u32 4294901760, %v5554_v36  ;;  %v6236_v30 = vand.u32 4294901760, %v5556_v45 }
 0x19b   : > { %v5685_v31 = vpack.c.bf16 %v1946_v33, %v1939_v48  ;;  %v6237_v32 = vand.u32 4294901760, %v5558_v42  ;;  %v1953_v4 = vand.u32 4294901760, %v1952_v51  ;;  %v1307_v40 = vsub.f32 %v5552_v26, %v6231_v35 }
 0x19c   : > { %v5690_v9 = vpack.c.bf16 %v1301_v57, %v1294_v12  ;;  %v1960_v39 = vand.u32 4294901760, %v1959_v38  ;;  %v1314_v20 = vsub.f32 %v5554_v36, %v6235_v16  ;;  %v1966_v33 = vsub.f32 %v5556_v45, %v6236_v30 }
 0x19d   : > { %v1973_v48 = vsub.f32 %v5558_v42, %v6237_v32  ;;  %v6240_v12 = vand.u32 4294901760, %v5567_v8  ;;  %v1308_v51 = vand.u32 4294901760, %v1307_v40  ;;  %v6243_v38 = vand.u32 4294901760, %v5569_v13 }
 0x19e   : > { %v5705_v57 = vpack.c.bf16 %v1960_v39, %v1953_v4  ;;  %v6244_v35 = vand.u32 4294901760, %v5571_v18  ;;  %v1315_v19 = vand.u32 4294901760, %v1314_v20  ;;  %v1967_v22 = vand.u32 4294901760, %v1966_v33 }
 0x19f   : > { %v1974_v16 = vand.u32 4294901760, %v1973_v48  ;;  %v1321_v30 = vsub.f32 %v5567_v8, %v6240_v12  ;;  %v1328_v32 = vsub.f32 %v5569_v13, %v6243_v38  ;;  %v6247_v39 = vand.u32 4294901760, %v5573_v23 }
 0x1a0   : > { %v1980_v4 = vsub.f32 %v5571_v18, %v6244_v35  ;;  %v6248_v40 = vand.u32 4294901760, %v5589_v53  ;;  %v5720_v6 = vpack.c.bf16 %v1315_v19, %v1308_v51  ;;  %v6249_v48 = vand.u32 4294901760, %v5591_v58 }
 0x1a1   : > { %v5722_v20 = vpack.c.bf16 %v1974_v16, %v1967_v22  ;;  %v1322_v33 = vand.u32 4294901760, %v1321_v30  ;;  %v1329_v12 = vand.u32 4294901760, %v1328_v32  ;;  %v1987_v38 = vsub.f32 %v5573_v23, %v6247_v39 }
 0x1a2   : > { %v1981_v50 = vand.u32 4294901760, %v1980_v4  ;;  %v1994_v35 = vsub.f32 %v5589_v53, %v6248_v40  ;;  %v2001_v19 = vsub.f32 %v5591_v58, %v6249_v48  ;;  %v1085_v48 = vld [vmem:[#allocation2] sm:$0xff] }
 0x1a3   : > { %v5734_v51 = vpack.c.bf16 %v1329_v12, %v1322_v33  ;;  %v1988_v16 = vand.u32 4294901760, %v1987_v38  ;;  %v1087_v38 = vld [vmem:[%s4899_s16] sm:$0x3] }
 0x1a4   : > { %v1995_v30 = vand.u32 4294901760, %v1994_v35  ;;  %v2002_v32 = vand.u32 4294901760, %v2001_v19  ;;  %v1102_v35 = vlaneseq }
 0x1a5   : > { %v5738_v4 = vpack.c.bf16 %v1988_v16, %v1981_v50 }
 0x1a6   : > { %v5740_v1 = vpack.c.bf16 %v2002_v32, %v1995_v30  ;;  %v5772_v16 = vshrl.u32 %v1102_v35, 7 }
 0x1a8   : > { %6312 = vst [vmem:[#allocation39_spill] sm:$0xff] %v5772_v16  ;;  %v1104_v30 = vsub.s32 0, %v5772_v16  ;;  %v1776_v32 = vsub.s32 1, %v5772_v16 }
 0x1aa   : > { %v1105_v12 = vrot.slane %v1087_v38, %v1104_v30  ;;  %v1777_v22 = vrot.slane %v1087_v38, %v1776_v32 }
 0x1e7   : > { %v1100_v40 = vpop.permute.xlu0 %1099 }
 0x1e8   : > { %v1106_v39 = vmul.f32 %v1105_v12, %v1100_v40 }
 0x1ea   : > { %v1107_v50 = vsub.f32 %v1085_v48, %v1106_v39 }
 0x1ec   : > { %v1108_v56 = vmul.f32 0.5, %v1107_v50  ;;  %v1772_v34 = vpop.permute.xlu0 %1771  ;;  %v6332_v50 = vld [vmem:[#allocation18_spill] sm:$0xff] }
 0x1ed   : > { %v1778_v33 = vmul.f32 %v1777_v22, %v1772_v34  ;;  %v6329_v22 = vld [vmem:[#allocation35_spill] sm:$0xff] }
 0x1ee   : > { %4644 = vtanh.f32 %v1108_v56 }
 0x1ef   : > { %v1779_v18 = vsub.f32 %v1085_v48, %v1778_v33  ;;  %v6333_v33 = vld [vmem:[#allocation38_spill] sm:$0xff] }
 0x1f1   : > { %v1780_v19 = vmul.f32 0.5, %v1779_v18 }
 0x1f3   : > { %4646 = vtanh.f32 %v1780_v19  ;;  %v6334_v19 = vld [vmem:[#allocation37_spill] sm:$0xff] }
 0x1f4   : > { %v6335_v32 = vpack.c.bf16 %v6333_v33, %v6334_v19 }
 0x1f8   : > { %v4645_v35 = vpop.eup %4644 }
 0x1f9   : > { %v1110_v53 = vmul.f32 0.5, %v4645_v35  ;;  %v6336_v35 = vld [vmem:[#allocation19_spill] sm:$0xff] }
 0x1fb   : > { %v1111_v58 = vadd.f32 0.5, %v1110_v53 }
 0x1fd   : > { %v4647_v23 = vpop.eup %4646  ;;  %v5777_v8 = vand.u32 4294901760, %v1111_v58 }
 0x1fe   : > { %v1782_v30 = vmul.f32 0.5, %v4647_v23 }
 0x1ff   : > { %v5780_v16 = vsub.f32 %v1111_v58, %v5777_v8  ;;  %v6313_v58 = vmov 0.0  }
 0x200   : > { %v1783_v40 = vadd.f32 0.5, %v1782_v30  ;;  %v6337_v30 = vld [vmem:[#allocation20_spill] sm:$0xff] }
 0x201   : > { %v1211_v39 = vand.u32 4294901760, %v5780_v16 }
 0x202   : > { %v5783_v12 = vand.u32 4294901760, %v1783_v40 }
 0x203   : > { %v1212_v34 = vsub.f32 %v5780_v16, %v1211_v39 }
 0x204   : > { %v5789_v56 = vsub.f32 %v1783_v40, %v5783_v12  ;;  %v6338_v40 = vld [vmem:[#allocation21_spill] sm:$0xff] }
 0x205   : > { %v1213_v18 = vand.u32 4294901760, %v1212_v34  ;;  %v6339_v34 = vld [vmem:[#allocation22_spill] sm:$0xff] }
 0x206   : > { %v1884_v53 = vand.u32 4294901760, %v5789_v56 }
 0x207   : > { %3679 = vmatmul.mubr.f32.vlgmr.msra.gmra.mrb[0].mxu1 %v1213_v18  ;;  %v6340_v18 = vld [vmem:[#allocation24_spill] sm:$0xff] }
 0x208   : > { %4266 = vmatpush3.bf16.msra.mxu1 %v5582_v3  ;;  %v1885_v23 = vsub.f32 %v5789_v56, %v1884_v53  ;;  %3713 = vmatprep.mubr.msk.f32.mxu1 %vm4752_vm1, %v6313_v58  ;;  %v6318_v3 = vpack.c.bf16 %v5497_v47, %v5492_v37 }
 0x209   : > { %4267 = vmatprep.subr.bf16.mxu1 %v6297_v55 }
 0x20a   : > { %v1886_v48 = vand.u32 4294901760, %v1885_v23  ;;  %v6341_v23 = vld [vmem:[#allocation23_spill] sm:$0xff] }
 0x20c   : > { %4269 = vmatpush3.bf16.msra.mxu1 %v5623_v5  ;;  %3889 = vmatmul.mubr.f32.vlgmr.msra.gmra.mrb[0].mxu0 %v1886_v48  ;;  %v6319_v5 = vpack.c.bf16 %v5508_v0, %v5503_v59  ;;  %v6342_v48 = vld [vmem:[#allocation26_spill] sm:$0xff] }
 0x20d   : > { %4410 = vmatpush3.bf16.msra.mxu0 %v5625_v27  ;;  %4270 = vmatprep.subr.bf16.mxu1 %v6297_v55  ;;  %v6316_v27 = vpack.c.bf16 %v5453_v14, %v5448_v15 }
 0x20e   : > { %4411 = vmatprep.subr.bf16.mxu0 %v6297_v55  ;;  %3923 = vmatprep.mubr.msk.f32.mxu0 %vm4752_vm1, %v6313_v58 }
 0x210   : > { %4272 = vmatpush3.bf16.msra.mxu1 %v5640_v41  ;;  %v6321_v41 = vpack.c.bf16 %v5528_v49, %v5523_v44 }
 0x211   : > { %4413 = vmatpush3.bf16.msra.mxu0 %v5642_v2  ;;  %4273 = vmatprep.subr.bf16.mxu1 %v6297_v55  ;;  %v6322_v2 = vpack.c.bf16 %v5538_v11, %v5533_v10 }
 0x212   : > { %4414 = vmatprep.subr.bf16.mxu0 %v6297_v55 }
 0x214   : > { %4275 = vmatpush3.bf16.msra.mxu1 %v5657_v29  ;;  %v6323_v29 = vpack.c.bf16 %v5545_v46, %v5542_v17 }
 0x215   : > { %4416 = vmatpush3.bf16.msra.mxu0 %v5669_v7  ;;  %4276 = vmatprep.subr.bf16.mxu1 %v6297_v55  ;;  %v6314_v7 = vpack.c.bf16 %v5247_v54, %v5245_v52 }
 0x216   : > { %4417 = vmatprep.subr.bf16.mxu0 %v6297_v55 }
 0x218   : > { %4278 = vmatpush3.bf16.msra.mxu1 %v5676_v43  ;;  %v6324_v43 = vpack.c.bf16 %v5549_v62, %v5547_v21 }
 0x219   : > { %4419 = vmatpush3.bf16.msra.mxu0 %v5685_v31  ;;  %4279 = vmatprep.subr.bf16.mxu1 %v6297_v55  ;;  %v6320_v31 = vpack.c.bf16 %v5518_v28, %v5513_v61 }
 0x21a   : > { %4420 = vmatprep.subr.bf16.mxu0 %v6297_v55 }
 0x21c   : > { %4281 = vmatpush3.bf16.msra.mxu1 %v5690_v9  ;;  %v6325_v9 = vpack.c.bf16 %v5554_v36, %v5552_v26 }
 0x21d   : > { %4422 = vmatpush3.bf16.msra.mxu0 %v5705_v57  ;;  %4282 = vmatprep.subr.bf16.mxu1 %v6297_v55  ;;  %v6326_v57 = vpack.c.bf16 %v5558_v42, %v5556_v45 }
 0x21e   : > { %4423 = vmatprep.subr.bf16.mxu0 %v6297_v55 }
 0x220   : > { %4284 = vmatpush3.bf16.msra.mxu1 %v5720_v6  ;;  %v6315_v6 = vpack.c.bf16 %v5443_v24, %v5438_v25 }
 0x221   : > { %4425 = vmatpush3.bf16.msra.mxu0 %v5722_v20  ;;  %4285 = vmatprep.subr.bf16.mxu1 %v6297_v55  ;;  %v6327_v20 = vld [vmem:[#allocation33_spill] sm:$0xff] }
 0x222   : > { %4426 = vmatprep.subr.bf16.mxu0 %v6297_v55 }
 0x224   : > { %4287 = vmatpush3.bf16.msra.mxu1 %v5734_v51  ;;  %v6328_v51 = vpack.c.bf16 %v5569_v13, %v6327_v20 }
 0x225   : > { %4428 = vmatpush3.bf16.msra.mxu0 %v5738_v4  ;;  %4288 = vmatprep.subr.bf16.mxu1 %v6297_v55  ;;  %v6330_v4 = vld [vmem:[#allocation34_spill] sm:$0xff] }
 0x226   : > { %4429 = vmatprep.subr.bf16.mxu0 %v6297_v55  ;;  %v6331_v38 = vpack.c.bf16 %v6329_v22, %v6330_v4 }
 0x227   : > { %3714 = vmatmul.mubr.f32.vlgmr.msra.gmra.mrb[0].mxu1 %v5777_v8 }
 0x228   : > { %4290 = vmatpush3.bf16.msra.mxu1 %v6314_v7  ;;  %3748 = vmatprep.mubr.msk.f32.mxu1 %vm4752_vm1, %v6313_v58  ;;  %v6343_v7 = vld [vmem:[#allocation25_spill] sm:$0xff] }
 0x229   : > { %4431 = vmatpush3.bf16.msra.mxu0 %v5740_v1  ;;  %4291 = vmatprep.subr.bf16.mxu1 %v6297_v55  ;;  %v6317_v1 = vpack.c.bf16 %v5487_v63, %v5482_v60 }
 0x22a   : > { %4432 = vmatprep.subr.bf16.mxu0 %v6297_v55 }
 0x22c   : > { %4293 = vmatpush3.bf16.msra.mxu1 %v6315_v6  ;;  %3924 = vmatmul.mubr.f32.vlgmr.msra.gmra.mrb[0].mxu0 %v5783_v12  ;;  %v6344_v6 = vld [vmem:[#allocation28_spill] sm:$0xff] }
 0x22d   : > { %4434 = vmatpush3.bf16.msra.mxu0 %v6316_v27  ;;  %4294 = vmatprep.subr.bf16.mxu1 %v6297_v55  ;;  %v6345_v27 = vld [vmem:[#allocation27_spill] sm:$0xff] }
 0x22e   : > { %4435 = vmatprep.subr.bf16.mxu0 %v6297_v55  ;;  %3958 = vmatprep.mubr.msk.f32.mxu0 %vm4752_vm1, %v6313_v58 }
 0x230   : > { %4296 = vmatpush3.bf16.msra.mxu1 %v6317_v1  ;;  %v6346_v1 = vld [vmem:[#allocation29_spill] sm:$0xff] }
 0x231   : > { %4437 = vmatpush3.bf16.msra.mxu0 %v6318_v3  ;;  %4297 = vmatprep.subr.bf16.mxu1 %v6297_v55  ;;  %v6347_v3 = vld [vmem:[#allocation30_spill] sm:$0xff] }
 0x232   : > { %4438 = vmatprep.subr.bf16.mxu0 %v6297_v55 }
 0x234   : > { %4299 = vmatpush3.bf16.msra.mxu1 %v6319_v5  ;;  %v6348_v5 = vld [vmem:[#allocation32_spill] sm:$0xff] }
 0x235   : > { %4440 = vmatpush3.bf16.msra.mxu0 %v6320_v31  ;;  %4300 = vmatprep.subr.bf16.mxu1 %v6297_v55  ;;  %v6349_v31 = vand.u32 4294901760, %v5245_v52  ;;  %v6354_v52 = vld [vmem:[#allocation36_spill] sm:$0xff] }
 0x236   : > { %4441 = vmatprep.subr.bf16.mxu0 %v6297_v55 }
 0x238   : > { %4302 = vmatpush3.bf16.msra.mxu1 %v6321_v41  ;;  %v6350_v41 = vand.u32 4294901760, %v5247_v54  ;;  %v6355_v54 = vand.u32 4294901760, %v5448_v15  ;;  %v6360_v15 = vand.u32 4294901760, %v5497_v47 }
 0x239   : > { %4443 = vmatpush3.bf16.msra.mxu0 %v6322_v2  ;;  %4303 = vmatprep.subr.bf16.mxu1 %v6297_v55 }
 0x23a   : > { %4444 = vmatprep.subr.bf16.mxu0 %v6297_v55  ;;  %v4337_v2 = vpack.c.bf16 %v6350_v41, %v6349_v31  ;;  %v6366_v31 = vand.u32 4294901760, %v5528_v49  ;;  %v6372_v49 = vand.u32 4294901760, %v5549_v62  ;;  %v6378_v62 = vand.u32 4294901760, %v5569_v13 }
 0x23c   : > { %4305 = vmatpush3.bf16.msra.mxu1 %v6323_v29  ;;  %v6351_v29 = vld [vmem:[#allocation31_spill] sm:$0xff] }
 0x23d   : > { %4446 = vmatpush3.bf16.msra.mxu0 %v6324_v43  ;;  %4306 = vmatprep.subr.bf16.mxu1 %v6297_v55  ;;  %v6352_v43 = vand.u32 4294901760, %v5438_v25  ;;  %v6358_v25 = vand.u32 4294901760, %v5487_v63 }
 0x23e   : > { %4447 = vmatprep.subr.bf16.mxu0 %v6297_v55 }
 0x240   : > { %4308 = vmatpush3.bf16.msra.mxu1 %v6325_v9  ;;  %v6353_v9 = vand.u32 4294901760, %v5443_v24  ;;  %v6357_v24 = vand.u32 4294901760, %v5482_v60  ;;  %v6362_v60 = vand.u32 4294901760, %v5508_v0  ;;  %v6368_v0 = vand.u32 4294901760, %v5538_v11 }
 0x241   : > { %4449 = vmatpush3.bf16.msra.mxu0 %v6326_v57  ;;  %4309 = vmatprep.subr.bf16.mxu1 %v6297_v55  ;;  %v6374_v11 = vand.u32 4294901760, %v5554_v36  ;;  %v6380_v36 = vand.u32 4294901760, %v6329_v22 }
 0x242   : > { %4450 = vmatprep.subr.bf16.mxu0 %v6297_v55  ;;  %v4340_v57 = vpack.c.bf16 %v6353_v9, %v6352_v43 }
 0x244   : > { %4311 = vmatpush3.bf16.msra.mxu1 %v6328_v51  ;;  %v6356_v51 = vand.u32 4294901760, %v5453_v14 }
 0x245   : > { %4452 = vmatpush3.bf16.msra.mxu0 %v6331_v38  ;;  %4312 = vmatprep.subr.bf16.mxu1 %v6297_v55 }
 0x246   : > { %4453 = vmatprep.subr.bf16.mxu0 %v6297_v55  ;;  %v4481_v38 = vpack.c.bf16 %v6356_v51, %v6355_v54 }
 0x247   : > { %3749 = vmatmul.mubr.f32.vlgmr.msra.gmra.mrb[0].mxu1 %v5780_v16  ;;  %v4343_v16 = vpack.c.bf16 %v6358_v25, %v6357_v24 }
 0x248   : > { %4314 = vmatpush3.bf16.msra.mxu1 %v6332_v50  ;;  %3783 = vmatprep.mubr.msk.f32.mxu1 %vm4752_vm1, %v6313_v58 }
 0x249   : > { %4455 = vmatpush3.bf16.msra.mxu0 %v6335_v32  ;;  %4315 = vmatprep.subr.bf16.mxu1 %v6297_v55  ;;  %v6365_v32 = vand.u32 4294901760, %v5523_v44  ;;  %v6371_v44 = vand.u32 4294901760, %v5547_v21  ;;  %v6377_v21 = vand.u32 4294901760, %v6327_v20  ;;  %v1088_v20 = vld [vmem:[%s4904_s18] sm:$0x3f]  ;;  %s3113_s18 = sshll.u32 (!%p3112_p1), %s4732_s13, 3 }
 0x24a   : > { %4456 = vmatprep.subr.bf16.mxu0 %v6297_v55  ;;  %v2453_v22 = vsel %vm2451_vm2, %v1088_v20, 0 }
 0x24b   : > { %v4349_v41 = vpack.c.bf16 %v6366_v31, %v6365_v32  ;;  %v4493_v9 = vpack.c.bf16 %v6372_v49, %v6371_v44  ;;  %v4358_v51 = vpack.c.bf16 %v6378_v62, %v6377_v21  ;;  %v6383_v44 = vld [vmem:[#allocation39_spill] sm:$0xff] (!%p3112_p1) }
 0x24c   : > { %4317 = vmatpush3.bf16.msra.mxu1 %v6336_v35  ;;  %3959 = vmatmul.mubr.f32.vlgmr.msra.gmra.mrb[0].mxu0 %v5789_v56  ;;  %v6361_v56 = vand.u32 4294901760, %v5503_v59  ;;  %v6367_v59 = vand.u32 4294901760, %v5533_v10  ;;  %v6373_v10 = vand.u32 4294901760, %v5552_v26  ;;  %v6379_v26 = vand.u32 4294901760, %v6330_v4 }
 0x24d   : > { %4458 = vmatpush3.bf16.msra.mxu0 %v6337_v30  ;;  %4318 = vmatprep.subr.bf16.mxu1 %v6297_v55  ;;  %v2456_v4 = vand.u32 4294901760, %v2453_v22 }
 0x24e   : > { %4459 = vmatprep.subr.bf16.mxu0 %v6297_v55  ;;  %3993 = vmatprep.mubr.msk.f32.mxu0 %vm4752_vm1, %v6313_v58  ;;  %v4346_v63 = vpack.c.bf16 %v6362_v60, %v6361_v56 }
 0x250   : > { %4320 = vmatpush3.bf16.msra.mxu1 %v6338_v40 }
 0x251   : > { %4461 = vmatpush3.bf16.msra.mxu0 %v6339_v34  ;;  %4321 = vmatprep.subr.bf16.mxu1 %v6297_v55 }
 0x252   : > { %4462 = vmatprep.subr.bf16.mxu0 %v6297_v55 }
 0x254   : > { %4323 = vmatpush3.bf16.msra.mxu1 %v6340_v18 }
 0x255   : > { %4464 = vmatpush3.bf16.msra.mxu0 %v6341_v23  ;;  %4324 = vmatprep.subr.bf16.mxu1 %v6297_v55 }
 0x256   : > { %4465 = vmatprep.subr.bf16.mxu0 %v6297_v55 }
 0x258   : > { %4326 = vmatpush3.bf16.msra.mxu1 %v6342_v48 }
 0x259   : > { %4467 = vmatpush3.bf16.msra.mxu0 %v6343_v7  ;;  %4327 = vmatprep.subr.bf16.mxu1 %v6297_v55 }
 0x25a   : > { %4468 = vmatprep.subr.bf16.mxu0 %v6297_v55 }
 0x25c   : > { %4329 = vmatpush3.bf16.msra.mxu1 %v6344_v6 }
 0x25d   : > { %4470 = vmatpush3.bf16.msra.mxu0 %v6345_v27  ;;  %4330 = vmatprep.subr.bf16.mxu1 %v6297_v55 }
 0x25e   : > { %4471 = vmatprep.subr.bf16.mxu0 %v6297_v55 }
 0x260   : > { %4332 = vmatpush3.bf16.msra.mxu1 %v6346_v1 }
 0x261   : > { %4473 = vmatpush3.bf16.msra.mxu0 %v6347_v3  ;;  %4333 = vmatprep.subr.bf16.mxu1 %v6297_v55 }
 0x262   : > { %4474 = vmatprep.subr.bf16.mxu0 %v6297_v55 }
 0x264   : > { %4335 = vmatpush3.bf16.msra.mxu1 %v6348_v5 }
 0x265   : > { %4476 = vmatpush3.bf16.msra.mxu0 %v6351_v29  ;;  %4336 = vmatprep.subr.bf16.mxu1 %v6297_v55 }
 0x266   : > { %4477 = vmatprep.subr.bf16.mxu0 %v6297_v55 }
 0x267   : > { %3784 = vmatmul.mubr.f32.vlgmr.msra.gmra.mrb[0].mxu1 %v1211_v39  ;;  %v6359_v39 = vand.u32 4294901760, %v5492_v37  ;;  %v6364_v37 = vand.u32 4294901760, %v5518_v28  ;;  %v6370_v28 = vand.u32 4294901760, %v5545_v46  ;;  %v6376_v46 = vand.u32 4294901760, %v5558_v42 }
 0x268   : > { %4338 = vmatpush3.bf16.msra.mxu1 %v4337_v2  ;;  %3818 = vmatprep.mubr.msk.f32.mxu1 %vm4752_vm1, %v6313_v58  ;;  %v4490_v2 = vpack.c.bf16 %v6368_v0, %v6367_v59  ;;  %v6382_v42 = vand.u32 4294901760, %v6333_v33  ;;  %v2901_v0 = vld [vmem:[#allocation3] sm:$0xff] }
 0x269   : > { %4479 = vmatpush3.bf16.msra.mxu0 %v6354_v52  ;;  %4339 = vmatprep.subr.bf16.mxu1 %v6297_v55  ;;  %v4484_v14 = vpack.c.bf16 %v6360_v15, %v6359_v39 }
 0x26a   : > { %4480 = vmatprep.subr.bf16.mxu0 %v6297_v55 }
 0x26c   : > { %4341 = vmatpush3.bf16.msra.mxu1 %v4340_v57  ;;  %3994 = vmatmul.mubr.f32.vlgmr.msra.gmra.mrb[0].mxu0 %v1884_v53  ;;  %v6363_v53 = vand.u32 4294901760, %v5513_v61  ;;  %v6369_v61 = vand.u32 4294901760, %v5542_v17  ;;  %v4355_v57 = vpack.c.bf16 %v6374_v11, %v6373_v10  ;;  %v6375_v17 = vand.u32 4294901760, %v5556_v45 }
 0x26d   : > { %4482 = vmatpush3.bf16.msra.mxu0 %v4481_v38  ;;  %4342 = vmatprep.subr.bf16.mxu1 %v6297_v55  ;;  %v4499_v38 = vpack.c.bf16 %v6380_v36, %v6379_v26  ;;  %v6381_v45 = vand.u32 4294901760, %v6334_v19 }
 0x26e   : > { %4483 = vmatprep.subr.bf16.mxu0 %v6297_v55  ;;  %4028 = vmatprep.mubr.msk.f32.mxu0 %vm4752_vm1, %v6313_v58  ;;  %v4487_v47 = vpack.c.bf16 %v6364_v37, %v6363_v53  ;;  %v4352_v43 = vpack.c.bf16 %v6370_v28, %v6369_v61  ;;  %v4496_v54 = vpack.c.bf16 %v6376_v46, %v6375_v17 }
 0x26f   : > { %v4502_v13 = vpack.c.bf16 %v6382_v42, %v6381_v45 }
 0x270   : > { %4344 = vmatpush3.bf16.msra.mxu1 %v4343_v16 }
 0x271   : > { %4485 = vmatpush3.bf16.msra.mxu0 %v4484_v14  ;;  %4345 = vmatprep.subr.bf16.mxu1 %v6297_v55 }
 0x272   : > { %4486 = vmatprep.subr.bf16.mxu0 %v6297_v55 }
 0x274   : > { %4347 = vmatpush3.bf16.msra.mxu1 %v4346_v63 }
 0x275   : > { %4488 = vmatpush3.bf16.msra.mxu0 %v4487_v47  ;;  %4348 = vmatprep.subr.bf16.mxu1 %v6297_v55 }
 0x276   : > { %4489 = vmatprep.subr.bf16.mxu0 %v6297_v55 }
 0x278   : > { %4350 = vmatpush3.bf16.msra.mxu1 %v4349_v41 }
 0x279   : > { %4491 = vmatpush3.bf16.msra.mxu0 %v4490_v2  ;;  %4351 = vmatprep.subr.bf16.mxu1 %v6297_v55 }
 0x27a   : > { %4492 = vmatprep.subr.bf16.mxu0 %v6297_v55 }
 0x27c   : > { %4353 = vmatpush3.bf16.msra.mxu1 %v4352_v43  ;;  %v2914_v43 = vstv (!%p3112_p1), %s3113_s18 }
 0x27d   : > { %4494 = vmatpush3.bf16.msra.mxu0 %v4493_v9  ;;  %4354 = vmatprep.subr.bf16.mxu1 %v6297_v55  ;;  %v2915_v49 = vadd.s32 (!%p3112_p1), %v2914_v43, %v6383_v44 }
 0x27e   : > { %4495 = vmatprep.subr.bf16.mxu0 %v6297_v55 }
 0x27f   : > { %vm2916_vm4 = vcmp.lt.s32.totalorder (!%p3112_p1), %v2915_v49, 20 }
 0x280   : > { %4356 = vmatpush3.bf16.msra.mxu1 %v4355_v57 }
 0x281   : > { %4497 = vmatpush3.bf16.msra.mxu0 %v4496_v54  ;;  %4357 = vmatprep.subr.bf16.mxu1 %v6297_v55 }
 0x282   : > { %4498 = vmatprep.subr.bf16.mxu0 %v6297_v55 }
 0x284   : > { %4359 = vmatpush3.bf16.msra.mxu1 %v4358_v51 }
 0x285   : > { %4500 = vmatpush3.bf16.msra.mxu0 %v4499_v38  ;;  %4360 = vmatprep.subr.bf16.mxu1 %v6297_v55 }
 0x286   : > { %4501 = vmatprep.subr.bf16.mxu0 %v6297_v55 }
 0x287   : > { %3819 = vmatmul.mubr.f32.vlgmr.msra.gmra.mrb[0].mxu1 %v5777_v8 }
 0x288   : > { %4362 = vmatpush3.bf16.msra.mxu1 %v6332_v50  ;;  %3853 = vmatprep.mubr.msk.f32.mxu1 %vm4752_vm1, %v6313_v58 }
 0x289   : > { %4503 = vmatpush3.bf16.msra.mxu0 %v4502_v13  ;;  %4363 = vmatprep.subr.bf16.mxu1 %v6297_v55 }
 0x28a   : > { %4504 = vmatprep.subr.bf16.mxu0 %v6297_v55 }
 0x28c   : > { %4365 = vmatpush3.bf16.msra.mxu1 %v6336_v35  ;;  %4029 = vmatmul.mubr.f32.vlgmr.msra.gmra.mrb[0].mxu0 %v5783_v12 }
 0x28d   : > { %4506 = vmatpush3.bf16.msra.mxu0 %v6337_v30  ;;  %4366 = vmatprep.subr.bf16.mxu1 %v6297_v55 }
 0x28e   : > { %4507 = vmatprep.subr.bf16.mxu0 %v6297_v55  ;;  %4063 = vmatprep.mubr.msk.f32.mxu0 %vm4752_vm1, %v6313_v58 }
 0x290   : > { %4368 = vmatpush3.bf16.msra.mxu1 %v6338_v40 }
 0x291   : > { %4509 = vmatpush3.bf16.msra.mxu0 %v6339_v34  ;;  %4369 = vmatprep.subr.bf16.mxu1 %v6297_v55 }
 0x292   : > { %4510 = vmatprep.subr.bf16.mxu0 %v6297_v55 }
 0x294   : > { %4371 = vmatpush3.bf16.msra.mxu1 %v6340_v18  ;;  %v2533_v18 = vsub.f32 %v2453_v22, %v2456_v4 }
 0x295   : > { %4512 = vmatpush3.bf16.msra.mxu0 %v6341_v23  ;;  %4372 = vmatprep.subr.bf16.mxu1 %v6297_v55 }
 0x296   : > { %4513 = vmatprep.subr.bf16.mxu0 %v6297_v55 }
 0x298   : > { %4374 = vmatpush3.bf16.msra.mxu1 %v6342_v48 }
 0x299   : > { %4515 = vmatpush3.bf16.msra.mxu0 %v6343_v7  ;;  %4375 = vmatprep.subr.bf16.mxu1 %v6297_v55  ;;  %v2534_v7 = vand.u32 4294901760, %v2533_v18 }
 0x29a   : > { %4516 = vmatprep.subr.bf16.mxu0 %v6297_v55 }
 0x29c   : > { %4377 = vmatpush3.bf16.msra.mxu1 %v6344_v6 }
 0x29d   : > { %4518 = vmatpush3.bf16.msra.mxu0 %v6345_v27  ;;  %4378 = vmatprep.subr.bf16.mxu1 %v6297_v55 }
 0x29e   : > { %4519 = vmatprep.subr.bf16.mxu0 %v6297_v55 }
 0x2a0   : > { %4380 = vmatpush3.bf16.msra.mxu1 %v6346_v1  ;;  %v2535_v1 = vsub.f32 %v2533_v18, %v2534_v7 }
 0x2a1   : > { %4521 = vmatpush3.bf16.msra.mxu0 %v6347_v3  ;;  %4381 = vmatprep.subr.bf16.mxu1 %v6297_v55 }
 0x2a2   : > { %4522 = vmatprep.subr.bf16.mxu0 %v6297_v55 }
 0x2a4   : > { %4383 = vmatpush3.bf16.msra.mxu1 %v6348_v5 }
 0x2a5   : > { %4524 = vmatpush3.bf16.msra.mxu0 %v6351_v29  ;;  %4081 = vmatprep.subr.mxu1 %v6313_v58  ;;  %v2536_v29 = vand.u32 4294901760, %v2535_v1 }
 0x2a6   : > { %4525 = vmatprep.subr.bf16.mxu0 %v6297_v55 }
 0x2a7   : > { %3854 = vmatmul.mubr.f32.vlgmr.msra.gmra.mrb[0].mxu1 %v5777_v8  ;;  %v3095_v8 = vld [vmem:[%s6158_s6] ss:$0 sm:$0xff] }
 0x2a8   : > { %4083 = vmatprep.mubr.msk.f32.mxu1 %vm4752_vm1, %v6313_v58  ;;  %4082 = vmatpush3.msra.mxu1 %v2456_v4 }
 0x2a9   : > { %4527 = vmatpush3.bf16.msra.mxu0 %v6354_v52  ;;  %4086 = vmatprep.subr.mxu1 %v6313_v58 }
 0x2aa   : > { %4066 = vmatprep.subr.mxu0 %v6313_v58 }
 0x2ac   : > { %4064 = vmatmul.mubr.f32.vlgmr.msra.gmra.mrb[0].mxu0 %v5783_v12 }
 0x2ad   : > { %4068 = vmatprep.mubr.msk.f32.mxu0 %vm4752_vm1, %v6313_v58  ;;  %4067 = vmatpush3.msra.mxu0 %v2456_v4 }
 0x2ae   : > { %4071 = vmatprep.subr.mxu0 %v6313_v58 }
 0x37a   : > { %v1765_v55 = vpop.f32.mrb[0].mxu1 }
 0x37b   : > { %v3855_v50 = vpop.f32.mrb[1].mxu1  ;;  %v4538_v12 = vadd.f32 %v3095_v8, %v1765_v55 }
 0x37f   : > { %v2438_v33 = vpop.f32.mrb[0].mxu0 }
 0x380   : > { %v4539_v19 = vadd.f32 %v4538_v12, %v2438_v33  ;;  %v4065_v35 = vpop.f32.mrb[1].mxu0 }
 0x382   : > { %v2443_v30 = vmul.f32 0.5, %v4539_v19 }
 0x384   : > { %4648 = vtanh.f32 %v2443_v30 }
 0x38e   : > { %v4649_v40 = vpop.eup %4648 }
 0x38f   : > { %v2445_v34 = vmul.f32 0.5, %v4649_v40 }
 0x391   : > { %v2446_v23 = vadd.f32 0.5, %v2445_v34 }
 0x393   : > { %v2449_v48 = vsel %vm2447_vm3, %v2446_v23, 0 }
 0x394   : > { %v2521_v6 = vand.u32 4294901760, %v2449_v48 }
 0x396   : > { %v2522_v27 = vsub.f32 %v2449_v48, %v2521_v6 }
 0x398   : > { %v2523_v3 = vand.u32 4294901760, %v2522_v27 }
 0x39a   : > { %4084 = vmatmul.mubr.f32.vlgmr.msra.gmra.mrb[2].mxu1 %v2523_v3  ;;  %v2524_v5 = vsub.f32 %v2522_v27, %v2523_v3 }
 0x39b   : > { %4087 = vmatpush3.msra.mxu1 %v2534_v7  ;;  %4088 = vmatprep.mubr.msk.f32.mxu1 %vm4752_vm1, %v6313_v58 }
 0x39c   : > { %v2525_v52 = vand.u32 4294901760, %v2524_v5  ;;  %4091 = vmatprep.subr.mxu1 %v6313_v58 }
 0x39e   : > { %4069 = vmatmul.mubr.f32.vlgmr.msra.gmra.mrb[2].mxu0 %v2525_v52  ;;  %4089 = vmatmul.mubr.f32.vlgmr.msra.gmra.mrb[4].mxu1 %v2521_v6 }
 0x39f   : > { %4072 = vmatpush3.msra.mxu0 %v2536_v29  ;;  %4073 = vmatprep.mubr.msk.f32.mxu0 %vm4752_vm1, %v6313_v58 }
 0x3a0   : > { %4076 = vmatprep.subr.mxu0 %v6313_v58  ;;  %4092 = vmatpush3.msra.mxu1 %v2456_v4 }
 0x3a1   : > { %4093 = vmatprep.mubr.msk.f32.mxu1 %vm4752_vm1, %v6313_v58 }
 0x3a2   : > { %4074 = vmatmul.mubr.f32.vlgmr.msra.gmra.mrb[4].mxu0 %v2521_v6  ;;  %4094 = vmatmul.mubr.f32.vlgmr.msra.gmra.mrb[6].mxu1 %v2521_v6 }
 0x3a3   : > { %4077 = vmatpush3.msra.mxu0 %v2533_v18  ;;  %4078 = vmatprep.mubr.msk.f32.mxu0 %vm4752_vm1, %v6313_v58 }
 0x3a6   : > { %4079 = vmatmul.mubr.f32.vlgmr.msra.gmra.mrb[6].mxu0 %v2522_v27 }
 0x46d   : > { %v2751_v24 = vpop.f32.mrb[2].mxu1 }
 0x46e   : > { %v4085_v25 = vpop.f32.mrb[3].mxu1 }
 0x471   : > { %v2527_v16 = vpop.f32.mrb[2].mxu0  ;;  %v2825_v39 = vpop.f32.mrb[4].mxu1 }
 0x472   : > { %v4070_v15 = vpop.f32.mrb[3].mxu0  ;;  %v4090_v14 = vpop.f32.mrb[5].mxu1 }
 0x475   : > { %v2603_v56 = vpop.f32.mrb[4].mxu0  ;;  %v2897_v60 = vpop.f32.mrb[6].mxu1 }
 0x476   : > { %v2604_v63 = vadd.f32 %v2603_v56, %v2527_v16  ;;  %v4075_v53 = vpop.f32.mrb[5].mxu0  ;;  %v4095_v37 = vpop.f32.mrb[7].mxu1 }
 0x479   : > { %v2677_v47 = vpop.f32.mrb[6].mxu0 }
 0x47a   : > { %v2678_v32 = vadd.f32 %v2677_v47, %v2604_v63  ;;  %v4080_v31 = vpop.f32.mrb[7].mxu0 }
 0x47c   : > { %v2752_v41 = vadd.f32 %v2751_v24, %v2678_v32 }
 0x47e   : > { %v2826_v59 = vadd.f32 %v2825_v39, %v2752_v41  ;;  %2907 = sbr.rel (%p3112_p1) target bundleno = 1373 (0x55d), region = 60 }
 0x480   : > { %v2898_v2 = vadd.f32 %v2897_v60, %v2826_v59 }
 0x482   : > { %v2902_v58 = vadd.f32 %v2901_v0, %v2898_v2 }
 0x484   : > { %2903 = vst [vmem:[#allocation3] sm:$0xff] %v2902_v58 }
 0x48b   : > { %v2908_v61 = vld [vmem:[#allocation3] sm:$0xff] }
 0x48c   : > { %2909 = vst [vmem:[%s385_s20] sm:$0xff] %v2908_v61  ;;  %v2910_v28 = vmul.f32 %v2908_v61, %v2908_v61 }
 0x48e   : > { %v2919_v9 = vsel %vm2916_vm4, %v2910_v28, 0.0 }
 0x48f   : > { %2920 = vadd.xlane.f32.xlu0 %v2919_v9 }
 0x51c   : > { %v2921_v10 = vpop.xlane.xlu0 %2920 }
 0x51d   : > { %v2922_v11 = vrot.slane %v2921_v10, 4 }
 0x51f   : > { %v2923_v57 = vadd.f32 %v2922_v11, %v2921_v10 }
 0x521   : > { %v2924_v17 = vrot.slane %v2923_v57, 2 }
 0x523   : > { %v2925_v46 = vadd.f32 %v2924_v17, %v2923_v57 }
 0x525   : > { %v2926_v54 = vrot.slane %v2925_v46, 1 }
 0x527   : > { %v2927_v21 = vadd.f32 %v2926_v54, %v2925_v46 }
 0x529   : > { %4561 = vpush %v2927_v21 }
 0x55a   : > { %s4562_s12 = spop %4561 }
 0x55b   : > { %v2929_v62 = vstv %s4562_s12 }
 0x55c   : > { %2931 = vst.msk [vmem:[%s6384_s23] sm:$0x1] %vm2930_vm5, %v2929_v62 }
 0x55d PF: > { %s6385_s26 = sld [smem:[#allocation8_spill]]  ;;  %s3115_s30 = sshll.u32 %s4732_s13, 7 }
 0x55e   : > { %s6387_s14 = sld [smem:[#allocation40_spill]]  ;;  %s2949_s22 = sshll.u32 %s385_s20, 4  ;;  %s2950_s22 = int_to_ptr.vmem [resolvable:$true] %s2949_s22 }
 0x55f   : > { %s4650_s16 = scalar_lea.vmem %s2950_s22, 128  ;;  %s4754_s28 = smov [#allocation4]  }
 0x560   : > { %p4651_p2 = scmp.ne.s32.totalorder %s2950_s22, %s4650_s16  ;;  %s4654_s15 = sshll.u32 %s4754_s28, 4  ;;  %s4655_s15 = int_to_ptr.vmem [resolvable:$false] %s4654_s15 }
 0x561   : > { %s4656_s18 = scalar_lea.vmem %s4655_s15, 256  ;;  %p4657_p6 = scmp.lt.s32.totalorder %s2950_s22, %s4655_s15 }
 0x562   : > { %p4652_p4 = pnand %p4651_p2, %p4854_p3  ;;  %p4658_p7 = scmp.lt.s32.totalorder %s4656_s18, %s4650_s16 }
 0x563   : > { %s6389_s25 = sand.u32 1, %s6385_s26  }
 0x564   : > { %s6388_s8 = smov %s6387_s14  ;;  %s6101_s21 = scalar_lea.hbm %s6387_s14, %s3115_s30 }
 0x565   : > { %s2933_s17 = scalar_lea.sflag [#allocation5], %s6389_s25  ;;  %p4653_p5 = pneg %p4652_p4 }
 0x566   : > { %p4659_p8 = por %p4658_p7, %p4657_p6 }
 0x568   : > { %p4660_p10 = pnand %p4659_p8, %p4653_p5 }
 0x56a   : > { %4663 = shalt.err (!%p4660_p10)
}
 0x56b   : > { %s4664_s13 = scalar_lea.hbm %s6101_s21, 128  ;;  %s4668_s12 = scalar_lea.hbm %s6388_s8, 384 }
 0x56c   : > { %p4665_p11 = scmp.ne.s32.totalorder %s6101_s21, %s4664_s13  ;;  %p4669_p0 = scmp.lt.u32.totalorder %s6101_s21, %s6388_s8 }
 0x56d   : > { %p4670_p1 = scmp.lt.u32.totalorder %s4668_s12, %s4664_s13  ;;  %p4672_p4 = scmp.lt.u32.totalorder %s4664_s13, %s6101_s21 }
 0x56e   : > { %p4666_p12 = pnand %p4665_p11, %p4854_p3 }
 0x56f   : > { %p4671_p2 = por %p4670_p1, %p4669_p0 }
 0x570   : > { %p4667_p13 = pneg %p4666_p12 }
 0x571   : > { %p4673_p5 = por %p4672_p4, %p4671_p2 }
 0x573   : > { %p4674_p6 = pnand %p4673_p5, %p4667_p13 }
 0x575   : > { %4677 = shalt.err (!%p4674_p6)
}
 0x576   : > { %4563 = dma.vmem_to_hbm [thread:$0]  (%p4854_p3), %s2950_s22, 128, %s6101_s21, %s2933_s17  }
 0x577 PF: > { %s6390_s23 = sld [smem:[#allocation12_spill]]  ;;  %s6391_s26 = sld [smem:[#allocation7_spill]] }
 0x57d   : > { %p4569_p7 = scmp.ge.s32.totalorder %s6390_s23, 2  ;;  %s2964_s11 = sand.u32 1, %s6391_s26  }
 0x57e   : > { %s2965_s10 = scalar_lea.sflag [#allocation5], %s2964_s11 }
 0x57f   : > { %p4566_p8 = pnand %p4569_p7, %p4864_p9 }
 0x581   : > { %4711 = dma.done.wait (!%p4566_p8), %s2965_s10, 128  }
 0x582   : > { %4713 = vsyncadd (!%p4566_p8), %s2965_s10, 4294967168  ;;  %s23_s16 = sadd.s32 1, %s6390_s23   ;;  %s6393_s30 = sld [smem:[#allocation8_spill]] }
 0x583   : > { %p20_p10 = scmp.ge.s32.totalorder %s23_s16, 11   ;;  %s6394_s10 = sld [smem:[#allocation9_spill]] }
 0x584   : > { %s6395_s11 = sld [smem:[#allocation17_spill]]  ;;  %s6396_s12 = sld [smem:[#allocation10_spill]] }
 0x585   : > { %s6397_s13 = sld [smem:[#allocation11_spill]]  ;;  %s6398_s14 = sld [smem:[#allocation13_spill]] }
 0x586   : > { %s6399_s15 = sld [smem:[#allocation15_spill]]  ;;  %22 = sbr.rel (!%p20_p10) target bundleno = 7 (0x7), region = 117 }
 0x58d   :  { %2976 = vsyncpa [#allocation5], 1 }
 0x58e   :  { %2978 = vsyncpa [#allocation5 + $0x1], 1 }

</bundles_post_ra>
